<compile_context>
chip_gen: v6e
topology: v6e:2x2x1
jax: 0.10.0
libtpu: 0.0.40
codegen_flags: <defaults>
</compile_context>

<pallas_src>
import functools
import numpy as np
import jax
import jax.numpy as jnp
from jax.experimental import pallas as pl
from jax.experimental.pallas import tpu as pltpu


def _round_up(x, m):
    return ((x + m - 1) // m) * m


def _tpu_vmem_bytes():
    """Physical VMEM per core; conservative (v7x) fallback if query fails."""
    try:
        return int(pltpu.get_tpu_info().vmem_capacity_bytes)
    except Exception:
        return 64 << 20


# ----------------------------------------------------------------------------
# Pallas kernel: full forward hot path for one (TN, Dp) row-block of S.
# ----------------------------------------------------------------------------
def hier_rel_kernel(
    s_ref,       # (TN, Dp) f32   input S block
    hmT_ref,     # (Dp, Mp) bf16  hier_mat, pre-transposed (for logits matmul)
    hm_ref,      # (Mp, Dp) bf16  hier_mat (for relation matmul)
    wgs_ref,     # (Dp, Dp) bf16  gate weight, S half      (layout: in, out)
    wgr_ref,     # (Dp, Dp) bf16  gate weight, relation half
    bg_ref,      # (1,  Dp) f32   gate bias
    w1_ref,      # (Dp, Hp) bf16  hier_mlp_1 weight (in, out)
    w2_ref,      # (Hp, Dp) bf16  hier_mlp_2 weight (in, out)
    gamma_ref,   # (1,  Dp) f32   LayerNorm weight
    beta_ref,    # (1,  Dp) f32   LayerNorm bias
    logits_ref,  # (TN, Mp) f32 out  hier_logits
    index_ref,   # (TN, Mp) f32 out  hier_index (softmax)
    out_ref,     # (TN, Dp) f32 out  output_hier (post add & norm)
    *, m_real, d_real,
):
    S32 = s_ref[...]                          # fp32 for elementwise / residual
    S16 = S32.astype(jnp.bfloat16)            # bf16 for the MXU

    # --- logits = S @ hier_mat.T  (weight pre-transposed -> plain dot, no XLU)
    logits = jnp.dot(S16, hmT_ref[...], preferred_element_type=jnp.float32)

    # mask padded hier columns before softmax
    col = jax.lax.broadcasted_iota(jnp.int32, logits.shape, 1)
    m_valid = col < m_real
    logits = jnp.where(m_valid, logits, jnp.float32(-1e30))
    logits_ref[...] = logits

    # --- stable softmax over the (masked) M axis; exact divide for parity
    mmax = jnp.max(logits, axis=-1, keepdims=True)
    e = jnp.where(m_valid, jnp.exp(logits - mmax), 0.0)
    denom = jnp.sum(e, axis=-1, keepdims=True)
    hier_index = e / denom                                        # (TN, Mp)
    index_ref[...] = hier_index

    # --- relation = softmax(logits) @ hier_mat
    hier_relation = jnp.dot(hier_index.astype(jnp.bfloat16), hm_ref[...],
                            preferred_element_type=jnp.float32)   # (TN, Dp)

    # --- gate: sigmoid(Linear(cat([S, rel]))) without materializing the concat
    gate = (jnp.dot(S16, wgs_ref[...], preferred_element_type=jnp.float32)
            + jnp.dot(hier_relation.astype(jnp.bfloat16), wgr_ref[...],
                      preferred_element_type=jnp.float32)
            + bg_ref[...])
    alpha = jax.nn.sigmoid(gate)                                  # fp32
    context = alpha * S32 + (1.0 - alpha) * hier_relation         # (TN, Dp)

    # --- MLP: relu(Linear) -> Linear   (mlp_bias=False)
    mid = jnp.maximum(
        jnp.dot(context.astype(jnp.bfloat16), w1_ref[...],
                preferred_element_type=jnp.float32), 0.0)
    out = jnp.dot(mid.astype(jnp.bfloat16), w2_ref[...],
                  preferred_element_type=jnp.float32)

    # --- add & norm (masked over the real D lanes only)
    out = out + S32
    dcol = jax.lax.broadcasted_iota(jnp.int32, out.shape, 1)
    d_valid = dcol < d_real
    inv_d = jnp.float32(1.0 / d_real)
    mean = jnp.sum(jnp.where(d_valid, out, 0.0), axis=-1, keepdims=True) * inv_d
    diff = jnp.where(d_valid, out - mean, 0.0)
    var = jnp.sum(diff * diff, axis=-1, keepdims=True) * inv_d
    normed = diff * jax.lax.rsqrt(var + 1e-5)
    out_ref[...] = normed * gamma_ref[...] + beta_ref[...]


# ----------------------------------------------------------------------------
# One-time weight preparation (hoisted out of the per-call path).
# ----------------------------------------------------------------------------
def prepare_weights(hier_mat, params):
    """Pad/cast all resident operands once; returns a dict of device arrays."""
    M, D = hier_mat.shape
    Hh = params["w1"].shape[1]
    Dp = _round_up(D, 128)
    Mp = _round_up(M, 128)
    Hp = _round_up(Hh, 128)
    f32, bf16 = jnp.float32, jnp.bfloat16

    def pad2(x, r, c, dtype):
        x = jnp.asarray(x)
        return jnp.zeros((r, c), dtype).at[:x.shape[0], :x.shape[1]].set(
            x.astype(dtype))

    wg = jnp.asarray(params["wg"])
    return {
        "hm":    pad2(hier_mat,        Mp, Dp, bf16),
        "hmT":   pad2(hier_mat.T,      Dp, Mp, bf16),
        "wgs":   pad2(wg[:D, :],       Dp, Dp, bf16),   # S half of gate weight
        "wgr":   pad2(wg[D:, :],       Dp, Dp, bf16),   # relation half
        "bg":    pad2(params["bg"],     1, Dp, f32),
        "w1":    pad2(params["w1"],    Dp, Hp, bf16),
        "w2":    pad2(params["w2"],    Hp, Dp, bf16),
        "gamma": pad2(params["gamma"],  1, Dp, f32),
        "beta":  pad2(params["beta"],   1, Dp, f32),
    }


# ----------------------------------------------------------------------------
# Jitted core: pad S, grid over N, slice back.
# ----------------------------------------------------------------------------
@functools.partial(jax.jit, static_argnames=("m_real", "single_buffer_weights"))
def _hier_rel_core(S, prepped, *, m_real, single_buffer_weights):
    N, D = S.shape
    Mp, Dp = prepped["hm"].shape
    Hp = prepped["w1"].shape[1]
    f32 = jnp.float32

    # --- VMEM budgeting & tile selection ------------------------------------
    wb = 1 if single_buffer_weights else 2
    weight_bytes = (2 * (2 * Mp * Dp + 2 * Dp * Dp + 2 * Dp * Hp)   # bf16 mats
                    + 3 * 8 * Dp * 4)                               # f32 vectors
    per_row_block = 4 * 2 * (2 * Dp + 2 * Mp)   # double-buffered S/out + M outs
    per_row_temp = 4 * (3 * Mp + 4 * Dp)        # in-kernel fp32 temporaries
    per_row = per_row_block + per_row_temp

    phys = _tpu_vmem_bytes()
    budget = (phys * 5) // 8                    # leave compiler-scratch headroom
    avail = max(budget - wb * weight_bytes, 16 * per_row)
    tn_cap = max(16, min(512, (avail // per_row) // 16 * 16))

    if N <= 16:
        TN = _round_up(max(N, 1), 16)           # tiny batch: single step
    else:
        # >= 2 grid steps so the "parallel" axis shards across v7x's 2 cores;
        # rows in multiples of 16 (bf16 sublane packing).
        TN = max(16, min(tn_cap, _round_up(-(-N // 2), 16)))
    Np = _round_up(N, TN)

    vmem_limit = int(1.25 * (wb * weight_bytes + TN * per_row)) + (2 << 20)
    vmem_limit = max(16 << 20, min(vmem_limit, (phys * 9) // 10))

    # --- pad S (the only per-call padding left) ------------------------------
    S_p = jnp.zeros((Np, Dp), f32).at[:N, :D].set(S.astype(f32))

    # --- specs ----------------------------------------------------------------
    def row_spec(shape):
        return pl.BlockSpec(shape, lambda i: (i, 0))

    def weight_spec(shape):
        if single_buffer_weights:
            # resident weights: constant index_map, never re-fetched -> 1 buffer
            return pl.BlockSpec(shape, lambda i: (0, 0),
                                pipeline_mode=pl.Buffered(1))
        return pl.BlockSpec(shape, lambda i: (0, 0))

    flops = 2 * Np * (2 * Mp * Dp + 2 * Dp * Dp + 2 * Dp * Hp)
    transcendentals = Np * (Mp + Dp + 1)
    bytes_accessed = (4 * (2 * Np * Dp + 2 * Np * Mp)
                      + 2 * (2 * Mp * Dp + 2 * Dp * Dp + 2 * Dp * Hp)
                      + 4 * 3 * Dp)

    kernel = functools.partial(hier_rel_kernel, m_real=m_real, d_real=D)

    logits_p, index_p, out_p = pl.pallas_call(
        kernel,
        out_shape=(
            jax.ShapeDtypeStruct((Np, Mp), f32),   # hier_logits (padded)
            jax.ShapeDtypeStruct((Np, Mp), f32),   # hier_index  (padded)
            jax.ShapeDtypeStruct((Np, Dp), f32),   # output_hier (padded)
        ),
        grid=(Np // TN,),
        in_specs=[
            row_spec((TN, Dp)),        # S block
            weight_spec((Dp, Mp)),     # hier_mat^T (resident)
            weight_spec((Mp, Dp)),     # hier_mat   (resident)
            weight_spec((Dp, Dp)),     # gate W, S half
            weight_spec((Dp, Dp)),     # gate W, rel half
            weight_spec((1, Dp)),      # gate bias
            weight_spec((Dp, Hp)),     # mlp1 W
            weight_spec((Hp, Dp)),     # mlp2 W
            weight_spec((1, Dp)),      # gamma
            weight_spec((1, Dp)),      # beta
        ],
        out_specs=(
            row_spec((TN, Mp)),
            row_spec((TN, Mp)),
            row_spec((TN, Dp)),
        ),
        compiler_params=pltpu.CompilerParams(
            dimension_semantics=("parallel",),
            vmem_limit_bytes=int(vmem_limit)),
        cost_estimate=pl.CostEstimate(
            flops=int(flops), transcendentals=int(transcendentals),
            bytes_accessed=int(bytes_accessed)),
    )(S_p, prepped["hmT"], prepped["hm"], prepped["wgs"], prepped["wgr"],
      prepped["bg"], prepped["w1"], prepped["w2"], prepped["gamma"],
      prepped["beta"])

    return logits_p[:N, :m_real], index_p[:N, :m_real], out_p[:N, :D]


# Runtime fallback: if the installed JAX rejects pipeline_mode on a top-level
# pallas_call, retrace once with default (double) buffering for the weights.
_SINGLE_BUF_OK = None


def _run_core(S, prepped, m_real):
    global _SINGLE_BUF_OK
    if _SINGLE_BUF_OK is None:
        try:
            out = _hier_rel_core(S, prepped, m_real=m_real,
                                 single_buffer_weights=True)
            jax.block_until_ready(out)
            _SINGLE_BUF_OK = True
            return out
        except Exception:
            _SINGLE_BUF_OK = False
    return _hier_rel_core(S, prepped, m_real=m_real,
                          single_buffer_weights=_SINGLE_BUF_OK)


# ----------------------------------------------------------------------------
# Public forward (matches MyHierRelLayer.forward semantics).
# ----------------------------------------------------------------------------
def my_hier_rel_layer(S, hier_mat, params,
                      hier_child_num=None, prev_layer_child_num=None,
                      prepped=None):
    """Returns (hier_logits, output_hier, next_logits, prev_logits)."""
    if prepped is None:
        prepped = prepare_weights(hier_mat, params)
    M = hier_mat.shape[0]

    hier_logits, hier_index, output_hier = _run_core(S, prepped, M)

    # TODO(synk): ragged child-count post-processing is a data-dependent
    # repeat / segment-sum; handled with plain-JAX glue on the kernel output.
    next_logits = None
    if hier_child_num is not None:
        reps = np.asarray(hier_child_num)
        expanded = jnp.repeat(hier_index, reps, axis=-1,
                              total_repeat_length=int(reps.sum()))
        next_logits = jax.nn.softmax(expanded, axis=-1)

    prev_logits = None
    if prev_layer_child_num is not None:
        cols, i = [], 0
        for c in prev_layer_child_num:
            cols.append(jnp.sum(hier_index[:, i:i + c], axis=-1, keepdims=True))
            i += c
        prev_logits = jnp.concatenate(cols, axis=-1)

    return hier_logits, output_hier, next_logits, prev_logits


# ----------------------------------------------------------------------------
# Deterministic parameter init (xavier-uniform weights, zero biases)
# ----------------------------------------------------------------------------
def init_params(key, linear_in, linear_out, mlp_hidden, mlp_out):
    def xavier(k, fan_in, fan_out):
        bound = float(np.sqrt(6.0 / (fan_in + fan_out)))
        # stored as (in, out) so the kernel computes x @ W
        return jax.random.uniform(k, (fan_in, fan_out), jnp.float32, -bound, bound)

    k1, k2, k3 = jax.random.split(key, 3)
    return {
        "wg": xavier(k1, linear_in, linear_out),
        "bg": jnp.zeros((1, linear_out), jnp.float32),
        "w1": xavier(k2, linear_out, mlp_hidden),
        "w2": xavier(k3, mlp_hidden, mlp_out),
        "gamma": jnp.ones((1, mlp_out), jnp.float32),
        "beta": jnp.zeros((1, mlp_out), jnp.float32),
    }


# Pure-JAX fp32 reference of the PyTorch forward (for correctness checking).
def _reference_forward(S, hier_mat, params):
    logits = S @ hier_mat.T
    index = jax.nn.softmax(logits, axis=-1)
    rel = index @ hier_mat
    concat = jnp.concatenate([S, rel], axis=-1)
    alpha = jax.nn.sigmoid(concat @ params["wg"] + params["bg"])
    context = alpha * S + (1.0 - alpha) * rel
    mid = jax.nn.relu(context @ params["w1"])
    out = mid @ params["w2"] + S
    mean = jnp.mean(out, axis=-1, keepdims=True)
    var = jnp.mean((out - mean) ** 2, axis=-1, keepdims=True)
    out = (out - mean) * jax.lax.rsqrt(var + 1e-5) * params["gamma"] + params["beta"]
    return logits, index, out


if __name__ == "__main__":
    # small shapes: S is (N, D) node features, hier_mat is (M, D)
    N, D, M = 8, 32, 16
    linear_in, linear_out = 2 * D, D      # gate consumes cat([S, rel]) -> D
    mlp_hidden, mlp_out = 64, D           # residual + LayerNorm requires mlp_out == D

    key = jax.random.PRNGKey(0)
    k_s, k_h, k_p = jax.random.split(key, 3)
    S = jax.random.normal(k_s, (N, D), jnp.float32)
    hier_mat = jax.random.normal(k_h, (M, D), jnp.float32)
    params = init_params(k_p, linear_in, linear_out, mlp_hidden, mlp_out)

    hier_child_num = tuple(1 + (i % 3) for i in range(M))   # len == M
    prev_layer_child_num = (4, 4, 4, 4)                     # sums to M

    # hoist weight padding/casting out of the per-call path
    prepped = prepare_weights(hier_mat, params)

    hier_logits, output_hier, next_logits, prev_logits = my_hier_rel_layer(
        S, hier_mat, params, hier_child_num, prev_layer_child_num,
        prepped=prepped)
    jax.block_until_ready((hier_logits, output_hier, next_logits, prev_logits))

    # shape checks
    assert hier_logits.shape == (N, M)
    assert output_hier.shape == (N, D)
    assert next_logits.shape == (N, sum(hier_child_num))
    assert prev_logits.shape == (N, len(prev_layer_child_num))
    assert bool(jnp.all(jnp.isfinite(hier_logits)))
    assert bool(jnp.all(jnp.isfinite(output_hier)))
    assert bool(jnp.all(jnp.isfinite(next_logits)))
    assert bool(jnp.all(jnp.isfinite(prev_logits)))

    # numerical parity vs fp32 reference (bf16 MXU inputs -> loose tolerance)
    ref_logits, ref_index, ref_out = _reference_forward(S, hier_mat, params)
    assert bool(jnp.allclose(hier_logits, ref_logits, atol=0.25))
    assert bool(jnp.allclose(output_hier, ref_out, atol=0.25))
    ref_prev = jnp.stack(
        [jnp.sum(ref_index[:, i:i + 4], axis=-1) for i in range(0, M, 4)], axis=-1)
    assert bool(jnp.allclose(prev_logits, ref_prev, atol=0.05))
    # exact-division softmax: per-row mass sums to ~1
    assert bool(jnp.allclose(jnp.sum(prev_logits, axis=-1), 1.0, atol=5e-3))

    print("KERNEL_OK")
</pallas_src>

<mosaic_0001>
module attributes {stable_mosaic.version = 11 : i64} {
  func.func @hier_rel_kernel(%arg0: i32, %arg1: memref<16x128xf32, #tpu.memory_space<vmem>>, %arg2: memref<128x128xbf16, #tpu.memory_space<vmem>>, %arg3: memref<128x128xbf16, #tpu.memory_space<vmem>>, %arg4: memref<128x128xbf16, #tpu.memory_space<vmem>>, %arg5: memref<128x128xbf16, #tpu.memory_space<vmem>>, %arg6: memref<1x128xf32, #tpu.memory_space<vmem>>, %arg7: memref<128x128xbf16, #tpu.memory_space<vmem>>, %arg8: memref<128x128xbf16, #tpu.memory_space<vmem>>, %arg9: memref<1x128xf32, #tpu.memory_space<vmem>>, %arg10: memref<1x128xf32, #tpu.memory_space<vmem>>, %arg11: memref<16x128xf32, #tpu.memory_space<vmem>>, %arg12: memref<16x128xf32, #tpu.memory_space<vmem>>, %arg13: memref<16x128xf32, #tpu.memory_space<vmem>>) attributes {dimension_semantics = [#tpu.dimension_semantics<parallel>], iteration_bounds = array<i64: 1>, scalar_prefetch = 0 : i64, scratch_operands = 0 : i64, tpu.core_type = #tpu.core_type<tc>, window_params = [{transform_indices = @transform_0, window_bounds = array<i64: 16, 128>}, {pipeline_mode = #tpu.pipeline_mode<synchronous>, transform_indices = @transform_1, window_bounds = array<i64: 128, 128>}, {pipeline_mode = #tpu.pipeline_mode<synchronous>, transform_indices = @transform_2, window_bounds = array<i64: 128, 128>}, {pipeline_mode = #tpu.pipeline_mode<synchronous>, transform_indices = @transform_3, window_bounds = array<i64: 128, 128>}, {pipeline_mode = #tpu.pipeline_mode<synchronous>, transform_indices = @transform_4, window_bounds = array<i64: 128, 128>}, {pipeline_mode = #tpu.pipeline_mode<synchronous>, transform_indices = @transform_5, window_bounds = array<i64: 1, 128>}, {pipeline_mode = #tpu.pipeline_mode<synchronous>, transform_indices = @transform_6, window_bounds = array<i64: 128, 128>}, {pipeline_mode = #tpu.pipeline_mode<synchronous>, transform_indices = @transform_7, window_bounds = array<i64: 128, 128>}, {pipeline_mode = #tpu.pipeline_mode<synchronous>, transform_indices = @transform_8, window_bounds = array<i64: 1, 128>}, {pipeline_mode = #tpu.pipeline_mode<synchronous>, transform_indices = @transform_9, window_bounds = array<i64: 1, 128>}, {transform_indices = @transform_10, window_bounds = array<i64: 16, 128>}, {transform_indices = @transform_11, window_bounds = array<i64: 16, 128>}, {transform_indices = @transform_12, window_bounds = array<i64: 16, 128>}]} {
    %c0 = arith.constant 0 : index
    %c0_0 = arith.constant 0 : index
    %0 = vector.load %arg1[%c0, %c0_0] : memref<16x128xf32, #tpu.memory_space<vmem>>, vector<16x128xf32>
    %1 = arith.truncf %0 : vector<16x128xf32> to vector<16x128xbf16>
    %c0_1 = arith.constant 0 : index
    %c0_2 = arith.constant 0 : index
    %2 = vector.load %arg2[%c0_1, %c0_2] : memref<128x128xbf16, #tpu.memory_space<vmem>>, vector<128x128xbf16>
    %cst = arith.constant dense<0.000000e+00> : vector<16x128xf32>
    %3 = tpu.matmul %1, %2, %cst {dimension_numbers = #tpu.dot_dimension_numbers<[1], [0], [0], [1], [0, 0, 1, 1], [], []>} : vector<16x128xbf16>, vector<128x128xbf16>, vector<16x128xf32> -> vector<16x128xf32>
    %4 = tpu.iota {dimensions = array<i32: 1>} : vector<16x128xi32>
    %c16_i32 = arith.constant 16 : i32
    %5 = vector.broadcast %c16_i32 : i32 to vector<16x128xi32>
    %6 = arith.cmpi slt, %4, %5 : vector<16x128xi32>
    %cst_3 = arith.constant -1.000000e+30 : f32
    %7 = vector.broadcast %cst_3 : f32 to vector<16x128xf32>
    %8 = arith.select %6, %3, %7 : vector<16x128xi1>, vector<16x128xf32>
    %c0_4 = arith.constant 0 : index
    %c0_5 = arith.constant 0 : index
    %9 = vector.load %arg11[%c0_4, %c0_5] : memref<16x128xf32, #tpu.memory_space<vmem>>, vector<16x128xf32>
    tpu.vector_store %arg11[%c0_4, %c0_5], %8 {strides = array<i32>} : memref<16x128xf32, #tpu.memory_space<vmem>>, vector<16x128xf32>,
    %cst_6 = arith.constant dense<0xFF800000> : vector<16xf32>
    %10 = vector.multi_reduction <maximumf>, %8, %cst_6 [1] : vector<16x128xf32> to vector<16xf32>
    %11 = vector.shape_cast %10 : vector<16xf32> to vector<16x1xf32>
    %12 = vector.broadcast %11 : vector<16x1xf32> to vector<16x128xf32>
    %13 = arith.subf %8, %12 : vector<16x128xf32>
    %14 = math.exp %13 : vector<16x128xf32>
    %cst_7 = arith.constant 0.000000e+00 : f32
    %15 = vector.broadcast %cst_7 : f32 to vector<16x128xf32>
    %16 = arith.select %6, %14, %15 : vector<16x128xi1>, vector<16x128xf32>
    %cst_8 = arith.constant dense<0.000000e+00> : vector<16xf32>
    %17 = vector.multi_reduction <add>, %16, %cst_8 [1] : vector<16x128xf32> to vector<16xf32>
    %18 = vector.shape_cast %17 : vector<16xf32> to vector<16x1xf32>
    %19 = vector.broadcast %18 : vector<16x1xf32> to vector<16x128xf32>
    %20 = arith.divf %16, %19 : vector<16x128xf32>
    %c0_9 = arith.constant 0 : index
    %c0_10 = arith.constant 0 : index
    %21 = vector.load %arg12[%c0_9, %c0_10] : memref<16x128xf32, #tpu.memory_space<vmem>>, vector<16x128xf32>
    tpu.vector_store %arg12[%c0_9, %c0_10], %20 {strides = array<i32>} : memref<16x128xf32, #tpu.memory_space<vmem>>, vector<16x128xf32>,
    %22 = arith.truncf %20 : vector<16x128xf32> to vector<16x128xbf16>
    %c0_11 = arith.constant 0 : index
    %c0_12 = arith.constant 0 : index
    %23 = vector.load %arg3[%c0_11, %c0_12] : memref<128x128xbf16, #tpu.memory_space<vmem>>, vector<128x128xbf16>
    %cst_13 = arith.constant dense<0.000000e+00> : vector<16x128xf32>
    %24 = tpu.matmul %22, %23, %cst_13 {dimension_numbers = #tpu.dot_dimension_numbers<[1], [0], [0], [1], [0, 0, 1, 1], [], []>} : vector<16x128xbf16>, vector<128x128xbf16>, vector<16x128xf32> -> vector<16x128xf32>
    %c0_14 = arith.constant 0 : index
    %c0_15 = arith.constant 0 : index
    %25 = vector.load %arg4[%c0_14, %c0_15] : memref<128x128xbf16, #tpu.memory_space<vmem>>, vector<128x128xbf16>
    %cst_16 = arith.constant dense<0.000000e+00> : vector<16x128xf32>
    %26 = tpu.matmul %1, %25, %cst_16 {dimension_numbers = #tpu.dot_dimension_numbers<[1], [0], [0], [1], [0, 0, 1, 1], [], []>} : vector<16x128xbf16>, vector<128x128xbf16>, vector<16x128xf32> -> vector<16x128xf32>
    %27 = arith.truncf %24 : vector<16x128xf32> to vector<16x128xbf16>
    %c0_17 = arith.constant 0 : index
    %c0_18 = arith.constant 0 : index
    %28 = vector.load %arg5[%c0_17, %c0_18] : memref<128x128xbf16, #tpu.memory_space<vmem>>, vector<128x128xbf16>
    %cst_19 = arith.constant dense<0.000000e+00> : vector<16x128xf32>
    %29 = tpu.matmul %27, %28, %cst_19 {dimension_numbers = #tpu.dot_dimension_numbers<[1], [0], [0], [1], [0, 0, 1, 1], [], []>} : vector<16x128xbf16>, vector<128x128xbf16>, vector<16x128xf32> -> vector<16x128xf32>
    %30 = arith.addf %26, %29 : vector<16x128xf32>
    %c0_20 = arith.constant 0 : index
    %c0_21 = arith.constant 0 : index
    %31 = vector.load %arg6[%c0_20, %c0_21] : memref<1x128xf32, #tpu.memory_space<vmem>>, vector<1x128xf32>
    %32 = vector.broadcast %31 : vector<1x128xf32> to vector<16x128xf32>
    %33 = arith.addf %30, %32 : vector<16x128xf32>
    %34 = arith.negf %33 : vector<16x128xf32>
    %35 = math.exp %34 : vector<16x128xf32>
    %cst_22 = arith.constant 1.000000e+00 : f32
    %36 = vector.broadcast %cst_22 : f32 to vector<16x128xf32>
    %37 = arith.addf %36, %35 : vector<16x128xf32>
    %38 = arith.divf %36, %37 : vector<16x128xf32>
    %39 = arith.mulf %38, %0 : vector<16x128xf32>
    %cst_23 = arith.constant 1.000000e+00 : f32
    %40 = vector.broadcast %cst_23 : f32 to vector<16x128xf32>
    %41 = arith.subf %40, %38 : vector<16x128xf32>
    %42 = arith.mulf %41, %24 : vector<16x128xf32>
    %43 = arith.addf %39, %42 : vector<16x128xf32>
    %44 = arith.truncf %43 : vector<16x128xf32> to vector<16x128xbf16>
    %c0_24 = arith.constant 0 : index
    %c0_25 = arith.constant 0 : index
    %45 = vector.load %arg7[%c0_24, %c0_25] : memref<128x128xbf16, #tpu.memory_space<vmem>>, vector<128x128xbf16>
    %cst_26 = arith.constant dense<0.000000e+00> : vector<16x128xf32>
    %46 = tpu.matmul %44, %45, %cst_26 {dimension_numbers = #tpu.dot_dimension_numbers<[1], [0], [0], [1], [0, 0, 1, 1], [], []>} : vector<16x128xbf16>, vector<128x128xbf16>, vector<16x128xf32> -> vector<16x128xf32>
    %cst_27 = arith.constant 0.000000e+00 : f32
    %47 = vector.broadcast %cst_27 : f32 to vector<16x128xf32>
    %48 = arith.maximumf %46, %47 : vector<16x128xf32>
    %49 = arith.truncf %48 : vector<16x128xf32> to vector<16x128xbf16>
    %c0_28 = arith.constant 0 : index
    %c0_29 = arith.constant 0 : index
    %50 = vector.load %arg8[%c0_28, %c0_29] : memref<128x128xbf16, #tpu.memory_space<vmem>>, vector<128x128xbf16>
    %cst_30 = arith.constant dense<0.000000e+00> : vector<16x128xf32>
    %51 = tpu.matmul %49, %50, %cst_30 {dimension_numbers = #tpu.dot_dimension_numbers<[1], [0], [0], [1], [0, 0, 1, 1], [], []>} : vector<16x128xbf16>, vector<128x128xbf16>, vector<16x128xf32> -> vector<16x128xf32>
    %52 = arith.addf %51, %0 : vector<16x128xf32>
    %53 = tpu.iota {dimensions = array<i32: 1>} : vector<16x128xi32>
    %c32_i32 = arith.constant 32 : i32
    %54 = vector.broadcast %c32_i32 : i32 to vector<16x128xi32>
    %55 = arith.cmpi slt, %53, %54 : vector<16x128xi32>
    %cst_31 = arith.constant 0.000000e+00 : f32
    %56 = vector.broadcast %cst_31 : f32 to vector<16x128xf32>
    %57 = arith.select %55, %52, %56 : vector<16x128xi1>, vector<16x128xf32>
    %cst_32 = arith.constant dense<0.000000e+00> : vector<16xf32>
    %58 = vector.multi_reduction <add>, %57, %cst_32 [1] : vector<16x128xf32> to vector<16xf32>
    %59 = vector.shape_cast %58 : vector<16xf32> to vector<16x1xf32>
    %cst_33 = arith.constant 3.125000e-02 : f32
    %60 = vector.broadcast %cst_33 : f32 to vector<16x1xf32>
    %61 = arith.mulf %59, %60 : vector<16x1xf32>
    %62 = vector.broadcast %61 : vector<16x1xf32> to vector<16x128xf32>
    %63 = arith.subf %52, %62 : vector<16x128xf32>
    %cst_34 = arith.constant 0.000000e+00 : f32
    %64 = vector.broadcast %cst_34 : f32 to vector<16x128xf32>
    %65 = arith.select %55, %63, %64 : vector<16x128xi1>, vector<16x128xf32>
    %66 = arith.mulf %65, %65 : vector<16x128xf32>
    %cst_35 = arith.constant dense<0.000000e+00> : vector<16xf32>
    %67 = vector.multi_reduction <add>, %66, %cst_35 [1] : vector<16x128xf32> to vector<16xf32>
    %68 = vector.shape_cast %67 : vector<16xf32> to vector<16x1xf32>
    %cst_36 = arith.constant 3.125000e-02 : f32
    %69 = vector.broadcast %cst_36 : f32 to vector<16x1xf32>
    %70 = arith.mulf %68, %69 : vector<16x1xf32>
    %cst_37 = arith.constant 9.99999974E-6 : f32
    %71 = vector.broadcast %cst_37 : f32 to vector<16x1xf32>
    %72 = arith.addf %70, %71 : vector<16x1xf32>
    %73 = math.rsqrt %72 : vector<16x1xf32>
    %74 = vector.broadcast %73 : vector<16x1xf32> to vector<16x128xf32>
    %75 = arith.mulf %65, %74 : vector<16x128xf32>
    %c0_38 = arith.constant 0 : index
    %c0_39 = arith.constant 0 : index
    %76 = vector.load %arg9[%c0_38, %c0_39] : memref<1x128xf32, #tpu.memory_space<vmem>>, vector<1x128xf32>
    %77 = vector.broadcast %76 : vector<1x128xf32> to vector<16x128xf32>
    %78 = arith.mulf %75, %77 : vector<16x128xf32>
    %c0_40 = arith.constant 0 : index
    %c0_41 = arith.constant 0 : index
    %79 = vector.load %arg10[%c0_40, %c0_41] : memref<1x128xf32, #tpu.memory_space<vmem>>, vector<1x128xf32>
    %80 = vector.broadcast %79 : vector<1x128xf32> to vector<16x128xf32>
    %81 = arith.addf %78, %80 : vector<16x128xf32>
    %c0_42 = arith.constant 0 : index
    %c0_43 = arith.constant 0 : index
    %82 = vector.load %arg13[%c0_42, %c0_43] : memref<16x128xf32, #tpu.memory_space<vmem>>, vector<16x128xf32>
    tpu.vector_store %arg13[%c0_42, %c0_43], %81 {strides = array<i32>} : memref<16x128xf32, #tpu.memory_space<vmem>>, vector<16x128xf32>,
    return
  }
  func.func @transform_0(%arg0: i32) -> (i32, i32) {
    %c0_i32 = arith.constant 0 : i32
    %c0_i32_0 = arith.constant 0 : i32
    return %arg0, %c0_i32 : i32, i32
  }
  func.func @transform_1(%arg0: i32) -> (i32, i32) {
    %c0_i32 = arith.constant 0 : i32
    %c0_i32_0 = arith.constant 0 : i32
    %c0_i32_1 = arith.constant 0 : i32
    return %c0_i32, %c0_i32_0 : i32, i32
  }
  func.func @transform_2(%arg0: i32) -> (i32, i32) {
    %c0_i32 = arith.constant 0 : i32
    %c0_i32_0 = arith.constant 0 : i32
    %c0_i32_1 = arith.constant 0 : i32
    return %c0_i32, %c0_i32_0 : i32, i32
  }
  func.func @transform_3(%arg0: i32) -> (i32, i32) {
    %c0_i32 = arith.constant 0 : i32
    %c0_i32_0 = arith.constant 0 : i32
    %c0_i32_1 = arith.constant 0 : i32
    return %c0_i32, %c0_i32_0 : i32, i32
  }
  func.func @transform_4(%arg0: i32) -> (i32, i32) {
    %c0_i32 = arith.constant 0 : i32
    %c0_i32_0 = arith.constant 0 : i32
    %c0_i32_1 = arith.constant 0 : i32
    return %c0_i32, %c0_i32_0 : i32, i32
  }
  func.func @transform_5(%arg0: i32) -> (i32, i32) {
    %c0_i32 = arith.constant 0 : i32
    %c0_i32_0 = arith.constant 0 : i32
    %c0_i32_1 = arith.constant 0 : i32
    return %c0_i32, %c0_i32_0 : i32, i32
  }
  func.func @transform_6(%arg0: i32) -> (i32, i32) {
    %c0_i32 = arith.constant 0 : i32
    %c0_i32_0 = arith.constant 0 : i32
    %c0_i32_1 = arith.constant 0 : i32
    return %c0_i32, %c0_i32_0 : i32, i32
  }
  func.func @transform_7(%arg0: i32) -> (i32, i32) {
    %c0_i32 = arith.constant 0 : i32
    %c0_i32_0 = arith.constant 0 : i32
    %c0_i32_1 = arith.constant 0 : i32
    return %c0_i32, %c0_i32_0 : i32, i32
  }
  func.func @transform_8(%arg0: i32) -> (i32, i32) {
    %c0_i32 = arith.constant 0 : i32
    %c0_i32_0 = arith.constant 0 : i32
    %c0_i32_1 = arith.constant 0 : i32
    return %c0_i32, %c0_i32_0 : i32, i32
  }
  func.func @transform_9(%arg0: i32) -> (i32, i32) {
    %c0_i32 = arith.constant 0 : i32
    %c0_i32_0 = arith.constant 0 : i32
    %c0_i32_1 = arith.constant 0 : i32
    return %c0_i32, %c0_i32_0 : i32, i32
  }
  func.func @transform_10(%arg0: i32) -> (i32, i32) {
    %c0_i32 = arith.constant 0 : i32
    %c0_i32_0 = arith.constant 0 : i32
    return %arg0, %c0_i32 : i32, i32
  }
  func.func @transform_11(%arg0: i32) -> (i32, i32) {
    %c0_i32 = arith.constant 0 : i32
    %c0_i32_0 = arith.constant 0 : i32
    return %arg0, %c0_i32 : i32, i32
  }
  func.func @transform_12(%arg0: i32) -> (i32, i32) {
    %c0_i32 = arith.constant 0 : i32
    %c0_i32_0 = arith.constant 0 : i32
    return %arg0, %c0_i32 : i32, i32
  }
}

module attributes {stable_mosaic.version = 11 : i64} {
  func.func @hier_rel_kernel(%arg0: i32, %arg1: memref<16x128xf32, #tpu.memory_space<vmem>>, %arg2: memref<128x128xbf16, #tpu.memory_space<vmem>>, %arg3: memref<128x128xbf16, #tpu.memory_space<vmem>>, %arg4: memref<128x128xbf16, #tpu.memory_space<vmem>>, %arg5: memref<128x128xbf16, #tpu.memory_space<vmem>>, %arg6: memref<1x128xf32, #tpu.memory_space<vmem>>, %arg7: memref<128x128xbf16, #tpu.memory_space<vmem>>, %arg8: memref<128x128xbf16, #tpu.memory_space<vmem>>, %arg9: memref<1x128xf32, #tpu.memory_space<vmem>>, %arg10: memref<1x128xf32, #tpu.memory_space<vmem>>, %arg11: memref<16x128xf32, #tpu.memory_space<vmem>>, %arg12: memref<16x128xf32, #tpu.memory_space<vmem>>, %arg13: memref<16x128xf32, #tpu.memory_space<vmem>>) attributes {dimension_semantics = [#tpu.dimension_semantics<parallel>], iteration_bounds = array<i64: 1>, scalar_prefetch = 0 : i64, scratch_operands = 0 : i64, tpu.core_type = #tpu.core_type<tc>, window_params = [{transform_indices = @transform_0, window_bounds = array<i64: 16, 128>}, {pipeline_mode = #tpu.pipeline_mode<synchronous>, transform_indices = @transform_1, window_bounds = array<i64: 128, 128>}, {pipeline_mode = #tpu.pipeline_mode<synchronous>, transform_indices = @transform_2, window_bounds = array<i64: 128, 128>}, {pipeline_mode = #tpu.pipeline_mode<synchronous>, transform_indices = @transform_3, window_bounds = array<i64: 128, 128>}, {pipeline_mode = #tpu.pipeline_mode<synchronous>, transform_indices = @transform_4, window_bounds = array<i64: 128, 128>}, {pipeline_mode = #tpu.pipeline_mode<synchronous>, transform_indices = @transform_5, window_bounds = array<i64: 1, 128>}, {pipeline_mode = #tpu.pipeline_mode<synchronous>, transform_indices = @transform_6, window_bounds = array<i64: 128, 128>}, {pipeline_mode = #tpu.pipeline_mode<synchronous>, transform_indices = @transform_7, window_bounds = array<i64: 128, 128>}, {pipeline_mode = #tpu.pipeline_mode<synchronous>, transform_indices = @transform_8, window_bounds = array<i64: 1, 128>}, {pipeline_mode = #tpu.pipeline_mode<synchronous>, transform_indices = @transform_9, window_bounds = array<i64: 1, 128>}, {transform_indices = @transform_10, window_bounds = array<i64: 16, 128>}, {transform_indices = @transform_11, window_bounds = array<i64: 16, 128>}, {transform_indices = @transform_12, window_bounds = array<i64: 16, 128>}]} {
    %c0 = arith.constant 0 : index
    %c0_0 = arith.constant 0 : index
    %0 = vector.load %arg1[%c0, %c0_0] : memref<16x128xf32, #tpu.memory_space<vmem>>, vector<16x128xf32>
    %1 = arith.truncf %0 : vector<16x128xf32> to vector<16x128xbf16>
    %c0_1 = arith.constant 0 : index
    %c0_2 = arith.constant 0 : index
    %2 = vector.load %arg2[%c0_1, %c0_2] : memref<128x128xbf16, #tpu.memory_space<vmem>>, vector<128x128xbf16>
    %cst = arith.constant dense<0.000000e+00> : vector<16x128xf32>
    %3 = tpu.matmul %1, %2, %cst {dimension_numbers = #tpu.dot_dimension_numbers<[1], [0], [0], [1], [0, 0, 1, 1], [], []>} : vector<16x128xbf16>, vector<128x128xbf16>, vector<16x128xf32> -> vector<16x128xf32>
    %4 = tpu.iota {dimensions = array<i32: 1>} : vector<16x128xi32>
    %c16_i32 = arith.constant 16 : i32
    %5 = vector.broadcast %c16_i32 : i32 to vector<16x128xi32>
    %6 = arith.cmpi slt, %4, %5 : vector<16x128xi32>
    %cst_3 = arith.constant -1.000000e+30 : f32
    %7 = vector.broadcast %cst_3 : f32 to vector<16x128xf32>
    %8 = arith.select %6, %3, %7 : vector<16x128xi1>, vector<16x128xf32>
    %c0_4 = arith.constant 0 : index
    %c0_5 = arith.constant 0 : index
    %9 = vector.load %arg11[%c0_4, %c0_5] : memref<16x128xf32, #tpu.memory_space<vmem>>, vector<16x128xf32>
    tpu.vector_store %arg11[%c0_4, %c0_5], %8 {strides = array<i32>} : memref<16x128xf32, #tpu.memory_space<vmem>>, vector<16x128xf32>,
    %cst_6 = arith.constant dense<0xFF800000> : vector<16xf32>
    %10 = vector.multi_reduction <maximumf>, %8, %cst_6 [1] : vector<16x128xf32> to vector<16xf32>
    %11 = vector.shape_cast %10 : vector<16xf32> to vector<16x1xf32>
    %12 = vector.broadcast %11 : vector<16x1xf32> to vector<16x128xf32>
    %13 = arith.subf %8, %12 : vector<16x128xf32>
    %14 = math.exp %13 : vector<16x128xf32>
    %cst_7 = arith.constant 0.000000e+00 : f32
    %15 = vector.broadcast %cst_7 : f32 to vector<16x128xf32>
    %16 = arith.select %6, %14, %15 : vector<16x128xi1>, vector<16x128xf32>
    %cst_8 = arith.constant dense<0.000000e+00> : vector<16xf32>
    %17 = vector.multi_reduction <add>, %16, %cst_8 [1] : vector<16x128xf32> to vector<16xf32>
    %18 = vector.shape_cast %17 : vector<16xf32> to vector<16x1xf32>
    %19 = vector.broadcast %18 : vector<16x1xf32> to vector<16x128xf32>
    %20 = arith.divf %16, %19 : vector<16x128xf32>
    %c0_9 = arith.constant 0 : index
    %c0_10 = arith.constant 0 : index
    %21 = vector.load %arg12[%c0_9, %c0_10] : memref<16x128xf32, #tpu.memory_space<vmem>>, vector<16x128xf32>
    tpu.vector_store %arg12[%c0_9, %c0_10], %20 {strides = array<i32>} : memref<16x128xf32, #tpu.memory_space<vmem>>, vector<16x128xf32>,
    %22 = arith.truncf %20 : vector<16x128xf32> to vector<16x128xbf16>
    %c0_11 = arith.constant 0 : index
    %c0_12 = arith.constant 0 : index
    %23 = vector.load %arg3[%c0_11, %c0_12] : memref<128x128xbf16, #tpu.memory_space<vmem>>, vector<128x128xbf16>
    %cst_13 = arith.constant dense<0.000000e+00> : vector<16x128xf32>
    %24 = tpu.matmul %22, %23, %cst_13 {dimension_numbers = #tpu.dot_dimension_numbers<[1], [0], [0], [1], [0, 0, 1, 1], [], []>} : vector<16x128xbf16>, vector<128x128xbf16>, vector<16x128xf32> -> vector<16x128xf32>
    %c0_14 = arith.constant 0 : index
    %c0_15 = arith.constant 0 : index
    %25 = vector.load %arg4[%c0_14, %c0_15] : memref<128x128xbf16, #tpu.memory_space<vmem>>, vector<128x128xbf16>
    %cst_16 = arith.constant dense<0.000000e+00> : vector<16x128xf32>
    %26 = tpu.matmul %1, %25, %cst_16 {dimension_numbers = #tpu.dot_dimension_numbers<[1], [0], [0], [1], [0, 0, 1, 1], [], []>} : vector<16x128xbf16>, vector<128x128xbf16>, vector<16x128xf32> -> vector<16x128xf32>
    %27 = arith.truncf %24 : vector<16x128xf32> to vector<16x128xbf16>
    %c0_17 = arith.constant 0 : index
    %c0_18 = arith.constant 0 : index
    %28 = vector.load %arg5[%c0_17, %c0_18] : memref<128x128xbf16, #tpu.memory_space<vmem>>, vector<128x128xbf16>
    %cst_19 = arith.constant dense<0.000000e+00> : vector<16x128xf32>
    %29 = tpu.matmul %27, %28, %cst_19 {dimension_numbers = #tpu.dot_dimension_numbers<[1], [0], [0], [1], [0, 0, 1, 1], [], []>} : vector<16x128xbf16>, vector<128x128xbf16>, vector<16x128xf32> -> vector<16x128xf32>
    %30 = arith.addf %26, %29 : vector<16x128xf32>
    %c0_20 = arith.constant 0 : index
    %c0_21 = arith.constant 0 : index
    %31 = vector.load %arg6[%c0_20, %c0_21] : memref<1x128xf32, #tpu.memory_space<vmem>>, vector<1x128xf32>
    %32 = vector.broadcast %31 : vector<1x128xf32> to vector<16x128xf32>
    %33 = arith.addf %30, %32 : vector<16x128xf32>
    %34 = arith.negf %33 : vector<16x128xf32>
    %35 = math.exp %34 : vector<16x128xf32>
    %cst_22 = arith.constant 1.000000e+00 : f32
    %36 = vector.broadcast %cst_22 : f32 to vector<16x128xf32>
    %37 = arith.addf %36, %35 : vector<16x128xf32>
    %38 = arith.divf %36, %37 : vector<16x128xf32>
    %39 = arith.mulf %38, %0 : vector<16x128xf32>
    %cst_23 = arith.constant 1.000000e+00 : f32
    %40 = vector.broadcast %cst_23 : f32 to vector<16x128xf32>
    %41 = arith.subf %40, %38 : vector<16x128xf32>
    %42 = arith.mulf %41, %24 : vector<16x128xf32>
    %43 = arith.addf %39, %42 : vector<16x128xf32>
    %44 = arith.truncf %43 : vector<16x128xf32> to vector<16x128xbf16>
    %c0_24 = arith.constant 0 : index
    %c0_25 = arith.constant 0 : index
    %45 = vector.load %arg7[%c0_24, %c0_25] : memref<128x128xbf16, #tpu.memory_space<vmem>>, vector<128x128xbf16>
    %cst_26 = arith.constant dense<0.000000e+00> : vector<16x128xf32>
    %46 = tpu.matmul %44, %45, %cst_26 {dimension_numbers = #tpu.dot_dimension_numbers<[1], [0], [0], [1], [0, 0, 1, 1], [], []>} : vector<16x128xbf16>, vector<128x128xbf16>, vector<16x128xf32> -> vector<16x128xf32>
    %cst_27 = arith.constant 0.000000e+00 : f32
    %47 = vector.broadcast %cst_27 : f32 to vector<16x128xf32>
    %48 = arith.maximumf %46, %47 : vector<16x128xf32>
    %49 = arith.truncf %48 : vector<16x128xf32> to vector<16x128xbf16>
    %c0_28 = arith.constant 0 : index
    %c0_29 = arith.constant 0 : index
    %50 = vector.load %arg8[%c0_28, %c0_29] : memref<128x128xbf16, #tpu.memory_space<vmem>>, vector<128x128xbf16>
    %cst_30 = arith.constant dense<0.000000e+00> : vector<16x128xf32>
    %51 = tpu.matmul %49, %50, %cst_30 {dimension_numbers = #tpu.dot_dimension_numbers<[1], [0], [0], [1], [0, 0, 1, 1], [], []>} : vector<16x128xbf16>, vector<128x128xbf16>, vector<16x128xf32> -> vector<16x128xf32>
    %52 = arith.addf %51, %0 : vector<16x128xf32>
    %53 = tpu.iota {dimensions = array<i32: 1>} : vector<16x128xi32>
    %c32_i32 = arith.constant 32 : i32
    %54 = vector.broadcast %c32_i32 : i32 to vector<16x128xi32>
    %55 = arith.cmpi slt, %53, %54 : vector<16x128xi32>
    %cst_31 = arith.constant 0.000000e+00 : f32
    %56 = vector.broadcast %cst_31 : f32 to vector<16x128xf32>
    %57 = arith.select %55, %52, %56 : vector<16x128xi1>, vector<16x128xf32>
    %cst_32 = arith.constant dense<0.000000e+00> : vector<16xf32>
    %58 = vector.multi_reduction <add>, %57, %cst_32 [1] : vector<16x128xf32> to vector<16xf32>
    %59 = vector.shape_cast %58 : vector<16xf32> to vector<16x1xf32>
    %cst_33 = arith.constant 3.125000e-02 : f32
    %60 = vector.broadcast %cst_33 : f32 to vector<16x1xf32>
    %61 = arith.mulf %59, %60 : vector<16x1xf32>
    %62 = vector.broadcast %61 : vector<16x1xf32> to vector<16x128xf32>
    %63 = arith.subf %52, %62 : vector<16x128xf32>
    %cst_34 = arith.constant 0.000000e+00 : f32
    %64 = vector.broadcast %cst_34 : f32 to vector<16x128xf32>
    %65 = arith.select %55, %63, %64 : vector<16x128xi1>, vector<16x128xf32>
    %66 = arith.mulf %65, %65 : vector<16x128xf32>
    %cst_35 = arith.constant dense<0.000000e+00> : vector<16xf32>
    %67 = vector.multi_reduction <add>, %66, %cst_35 [1] : vector<16x128xf32> to vector<16xf32>
    %68 = vector.shape_cast %67 : vector<16xf32> to vector<16x1xf32>
    %cst_36 = arith.constant 3.125000e-02 : f32
    %69 = vector.broadcast %cst_36 : f32 to vector<16x1xf32>
    %70 = arith.mulf %68, %69 : vector<16x1xf32>
    %cst_37 = arith.constant 9.99999974E-6 : f32
    %71 = vector.broadcast %cst_37 : f32 to vector<16x1xf32>
    %72 = arith.addf %70, %71 : vector<16x1xf32>
    %73 = math.rsqrt %72 : vector<16x1xf32>
    %74 = vector.broadcast %73 : vector<16x1xf32> to vector<16x128xf32>
    %75 = arith.mulf %65, %74 : vector<16x128xf32>
    %c0_38 = arith.constant 0 : index
    %c0_39 = arith.constant 0 : index
    %76 = vector.load %arg9[%c0_38, %c0_39] : memref<1x128xf32, #tpu.memory_space<vmem>>, vector<1x128xf32>
    %77 = vector.broadcast %76 : vector<1x128xf32> to vector<16x128xf32>
    %78 = arith.mulf %75, %77 : vector<16x128xf32>
    %c0_40 = arith.constant 0 : index
    %c0_41 = arith.constant 0 : index
    %79 = vector.load %arg10[%c0_40, %c0_41] : memref<1x128xf32, #tpu.memory_space<vmem>>, vector<1x128xf32>
    %80 = vector.broadcast %79 : vector<1x128xf32> to vector<16x128xf32>
    %81 = arith.addf %78, %80 : vector<16x128xf32>
    %c0_42 = arith.constant 0 : index
    %c0_43 = arith.constant 0 : index
    %82 = vector.load %arg13[%c0_42, %c0_43] : memref<16x128xf32, #tpu.memory_space<vmem>>, vector<16x128xf32>
    tpu.vector_store %arg13[%c0_42, %c0_43], %81 {strides = array<i32>} : memref<16x128xf32, #tpu.memory_space<vmem>>, vector<16x128xf32>,
    return
  }
  func.func @transform_0(%arg0: i32) -> (i32, i32) {
    %c0_i32 = arith.constant 0 : i32
    %c0_i32_0 = arith.constant 0 : i32
    return %arg0, %c0_i32 : i32, i32
  }
  func.func @transform_1(%arg0: i32) -> (i32, i32) {
    %c0_i32 = arith.constant 0 : i32
    %c0_i32_0 = arith.constant 0 : i32
    %c0_i32_1 = arith.constant 0 : i32
    return %c0_i32, %c0_i32_0 : i32, i32
  }
  func.func @transform_2(%arg0: i32) -> (i32, i32) {
    %c0_i32 = arith.constant 0 : i32
    %c0_i32_0 = arith.constant 0 : i32
    %c0_i32_1 = arith.constant 0 : i32
    return %c0_i32, %c0_i32_0 : i32, i32
  }
  func.func @transform_3(%arg0: i32) -> (i32, i32) {
    %c0_i32 = arith.constant 0 : i32
    %c0_i32_0 = arith.constant 0 : i32
    %c0_i32_1 = arith.constant 0 : i32
    return %c0_i32, %c0_i32_0 : i32, i32
  }
  func.func @transform_4(%arg0: i32) -> (i32, i32) {
    %c0_i32 = arith.constant 0 : i32
    %c0_i32_0 = arith.constant 0 : i32
    %c0_i32_1 = arith.constant 0 : i32
    return %c0_i32, %c0_i32_0 : i32, i32
  }
  func.func @transform_5(%arg0: i32) -> (i32, i32) {
    %c0_i32 = arith.constant 0 : i32
    %c0_i32_0 = arith.constant 0 : i32
    %c0_i32_1 = arith.constant 0 : i32
    return %c0_i32, %c0_i32_0 : i32, i32
  }
  func.func @transform_6(%arg0: i32) -> (i32, i32) {
    %c0_i32 = arith.constant 0 : i32
    %c0_i32_0 = arith.constant 0 : i32
    %c0_i32_1 = arith.constant 0 : i32
    return %c0_i32, %c0_i32_0 : i32, i32
  }
  func.func @transform_7(%arg0: i32) -> (i32, i32) {
    %c0_i32 = arith.constant 0 : i32
    %c0_i32_0 = arith.constant 0 : i32
    %c0_i32_1 = arith.constant 0 : i32
    return %c0_i32, %c0_i32_0 : i32, i32
  }
  func.func @transform_8(%arg0: i32) -> (i32, i32) {
    %c0_i32 = arith.constant 0 : i32
    %c0_i32_0 = arith.constant 0 : i32
    %c0_i32_1 = arith.constant 0 : i32
    return %c0_i32, %c0_i32_0 : i32, i32
  }
  func.func @transform_9(%arg0: i32) -> (i32, i32) {
    %c0_i32 = arith.constant 0 : i32
    %c0_i32_0 = arith.constant 0 : i32
    %c0_i32_1 = arith.constant 0 : i32
    return %c0_i32, %c0_i32_0 : i32, i32
  }
  func.func @transform_10(%arg0: i32) -> (i32, i32) {
    %c0_i32 = arith.constant 0 : i32
    %c0_i32_0 = arith.constant 0 : i32
    return %arg0, %c0_i32 : i32, i32
  }
  func.func @transform_11(%arg0: i32) -> (i32, i32) {
    %c0_i32 = arith.constant 0 : i32
    %c0_i32_0 = arith.constant 0 : i32
    return %arg0, %c0_i32 : i32, i32
  }
  func.func @transform_12(%arg0: i32) -> (i32, i32) {
    %c0_i32 = arith.constant 0 : i32
    %c0_i32_0 = arith.constant 0 : i32
    return %arg0, %c0_i32 : i32, i32
  }
}

</mosaic_0001>

<bundles_post_ra>
// kernel: _hier_rel_core.1
= control target key start
LH: loop header
LB: loop body
LE: loop exit
PB: predicated region body
PF: predicated region fallthrough
CT: control target
= control target key end

     0   :  { %18 = vsyncpa [#allocation3], 0  ;;  %s1560_s0 = inlined_call_operand.vmem [shape: f32[16,128], index: 0, kind: input, shape index: {}]   ;;  %s1561_s1 = inlined_call_operand.hbm [shape: bf16[128,128], index: 1, kind: input, shape index: {}]   ;;  %s1562_s2 = inlined_call_operand.hbm [shape: bf16[128,128], index: 2, kind: input, shape index: {}]   ;;  %s1563_s3 = inlined_call_operand.hbm [shape: bf16[128,128], index: 3, kind: input, shape index: {}]   ;;  %s1564_s4 = inlined_call_operand.hbm [shape: bf16[128,128], index: 4, kind: input, shape index: {}]   ;;  %s1565_s5 = inlined_call_operand.vmem [shape: f32[1,128], index: 5, kind: input, shape index: {}]   ;;  %s1566_s6 = inlined_call_operand.hbm [shape: bf16[128,128], index: 6, kind: input, shape index: {}]   ;;  %s1567_s7 = inlined_call_operand.hbm [shape: bf16[128,128], index: 7, kind: input, shape index: {}]   ;;  %s1568_s8 = inlined_call_operand.vmem [shape: f32[1,128], index: 8, kind: input, shape index: {}]   ;;  %s1569_s9 = inlined_call_operand.vmem [shape: f32[1,128], index: 9, kind: input, shape index: {}]   ;;  %s1570_s10 = inlined_call_operand.vmem [shape: f32[16,128], index: 10, kind: output, shape index: {0}]   ;;  %s1571_s11 = inlined_call_operand.vmem [shape: f32[16,128], index: 11, kind: output, shape index: {1}]   ;;  %s1572_s12 = inlined_call_operand.vmem [shape: f32[16,128], index: 12, kind: output, shape index: {2}]  }
   0x1   :  { %19 = vsyncpa [#allocation5], 0 }
   0x2   :  { %20 = vsyncpa [#allocation8], 0 }
   0x3   :  { %21 = vsyncpa [#allocation11], 0  ;;  %s1314_s21 = smov [#allocation4]   ;;  %s1315_s23 = smov [#allocation7]  }
   0x4   :  { %s41_s22 = sshll.u32 %s1314_s21, 4  ;;  %s65_s24 = sshll.u32 %s1315_s23, 4  ;;  %s42_s22 = int_to_ptr.vmem [resolvable:$true] %s41_s22  ;;  %s66_s24 = int_to_ptr.vmem [resolvable:$true] %s65_s24 }
   0x5   :  { %s1194_s25 = scalar_lea.vmem %s42_s22, 1024  ;;  %p1199_p1 = scmp.lt.s32.totalorder %s42_s22, %s42_s22 }
   0x6   :  { %p1195_p0 = scmp.ne.s32.totalorder %s42_s22, %s1194_s25  ;;  %p1200_p2 = scmp.lt.s32.totalorder %s1194_s25, %s1194_s25 }
   0x8   :  { %p1201_p3 = por %p1200_p2, %p1199_p1 }
   0xa   :  { %p1202_p4 = pnand %p1201_p3, %p1195_p0 }
   0xc   :  { %1205 = shalt.err (!%p1202_p4)
}
   0xd   :  { %s1316_s26 = smov 64   ;;  %s1317_s27 = smov 4  }
   0xe   :  { %47 = dma.hbm_to_vmem [thread:$0]  %s1562_s2, 1024, %s42_s22, [#allocation5], %s1316_s26, %s1316_s26, %s1317_s27  }
   0xf   :  { %s1214_s30 = scalar_lea.vmem %s66_s24, 1024  ;;  %p1219_p6 = scmp.lt.s32.totalorder %s66_s24, %s66_s24 }
  0x10   :  { %p1215_p5 = scmp.ne.s32.totalorder %s66_s24, %s1214_s30  ;;  %p1220_p7 = scmp.lt.s32.totalorder %s1214_s30, %s1214_s30 }
  0x12   :  { %p1221_p8 = por %p1220_p7, %p1219_p6 }
  0x14   :  { %p1222_p9 = pnand %p1221_p8, %p1215_p5 }
  0x16   :  { %1225 = shalt.err (!%p1222_p9)
}
  0x17   :  { %71 = dma.hbm_to_vmem [thread:$0]  %s1564_s4, 1024, %s66_s24, [#allocation8], %s1316_s26, %s1316_s26, %s1317_s27  }
  0x18   :  { %s1318_s15 = smov [#allocation2]   ;;  %s1319_s17 = smov [#allocation6]  }
  0x19   :  { %s29_s16 = sshll.u32 %s1318_s15, 4  ;;  %s53_s18 = sshll.u32 %s1319_s17, 4  ;;  %s30_s16 = int_to_ptr.vmem [resolvable:$true] %s29_s16  ;;  %s54_s18 = int_to_ptr.vmem [resolvable:$true] %s53_s18 }
  0x1a   :  { %s1234_s2 = scalar_lea.vmem %s30_s16, 1024  ;;  %p1239_p11 = scmp.lt.s32.totalorder %s30_s16, %s30_s16 }
  0x1b   :  { %p1235_p10 = scmp.ne.s32.totalorder %s30_s16, %s1234_s2  ;;  %p1240_p12 = scmp.lt.s32.totalorder %s1234_s2, %s1234_s2 }
  0x1d   :  { %p1241_p13 = por %p1240_p12, %p1239_p11 }
  0x1f   :  { %p1242_p0 = pnand %p1241_p13, %p1235_p10 }
  0x21   :  { %1245 = shalt.err (!%p1242_p0)
}
  0x22   :  { %35 = dma.hbm_to_vmem [thread:$0]  %s1561_s1, 1024, %s30_s16, [#allocation3], %s1316_s26, %s1316_s26, %s1317_s27  }
  0x23   :  { %s1254_s4 = scalar_lea.vmem %s54_s18, 1024  ;;  %p1259_p2 = scmp.lt.s32.totalorder %s54_s18, %s54_s18 }
  0x24   :  { %p1255_p1 = scmp.ne.s32.totalorder %s54_s18, %s1254_s4  ;;  %p1260_p3 = scmp.lt.s32.totalorder %s1254_s4, %s1254_s4 }
  0x26   :  { %p1261_p4 = por %p1260_p3, %p1259_p2 }
  0x28   :  { %p1262_p5 = pnand %p1261_p4, %p1255_p1 }
  0x2a   :  { %1265 = shalt.err (!%p1262_p5)
}
  0x2b   :  { %59 = dma.hbm_to_vmem [thread:$0]  %s1563_s3, 1024, %s54_s18, [#allocation5], %s1316_s26, %s1316_s26, %s1317_s27  }
  0x2c   :  { %s1320_s23 = smov [#allocation9]   ;;  %s1321_s25 = smov [#allocation10]  }
  0x2d   :  { %s79_s24 = sshll.u32 %s1320_s23, 4  ;;  %s91_s28 = sshll.u32 %s1321_s25, 4  ;;  %s80_s24 = int_to_ptr.vmem [resolvable:$true] %s79_s24  ;;  %s92_s28 = int_to_ptr.vmem [resolvable:$true] %s91_s28 }
  0x2e   :  { %s1274_s1 = scalar_lea.vmem %s80_s24, 1024  ;;  %p1279_p7 = scmp.lt.s32.totalorder %s80_s24, %s80_s24 }
  0x2f   :  { %p1275_p6 = scmp.ne.s32.totalorder %s80_s24, %s1274_s1  ;;  %p1280_p8 = scmp.lt.s32.totalorder %s1274_s1, %s1274_s1 }
  0x31   :  { %p1281_p9 = por %p1280_p8, %p1279_p7 }
  0x33   :  { %p1282_p10 = pnand %p1281_p9, %p1275_p6 }
  0x35   :  { %1285 = shalt.err (!%p1282_p10)
}
  0x36   :  { %85 = dma.hbm_to_vmem [thread:$0]  %s1566_s6, 1024, %s80_s24, [#allocation8], %s1316_s26, %s1316_s26, %s1317_s27  }
  0x37   :  { %s1294_s3 = scalar_lea.vmem %s92_s28, 1024  ;;  %p1299_p12 = scmp.lt.s32.totalorder %s92_s28, %s92_s28 }
  0x38   :  { %p1295_p11 = scmp.ne.s32.totalorder %s92_s28, %s1294_s3  ;;  %p1300_p13 = scmp.lt.s32.totalorder %s1294_s3, %s1294_s3 }
  0x3a   :  { %p1301_p0 = por %p1300_p13, %p1299_p12 }
  0x3c   :  { %p1302_p1 = pnand %p1301_p0, %p1295_p11 }
  0x3e   :  { %1305 = shalt.err (!%p1302_p1)
}
  0x3f   :  { %97 = dma.hbm_to_vmem [thread:$0]  %s1567_s7, 1024, %s92_s28, [#allocation11], %s1316_s26, %s1316_s26, %s1317_s27  }
  0x40   :  { %1306 = dma.done.wait [#allocation3], 1024  }
  0x41   :  { %1307 = vsyncadd [#allocation3], 4294966272 }
  0x42   :  { %1308 = dma.done.wait [#allocation5], 2048  }
  0x43   :  { %1309 = vsyncadd [#allocation5], 4294965248 }
  0x44   :  { %1310 = dma.done.wait [#allocation8], 2048  }
  0x45   :  { %1311 = vsyncadd [#allocation8], 4294965248 }
  0x46   :  { %1312 = dma.done.wait [#allocation11], 1024  }
  0x47   :  { %1313 = vsyncadd [#allocation11], 4294966272  ;;  %v1322_v0 = vmov 0.0   ;;  %vm1323_vm0 = vmmov 0   ;;  %v1118_v1 = vld [vmem:[#allocation2 + $0x38] sm:$0xff]   ;;  %v1119_v2 = vld [vmem:[#allocation2 + $0x30] sm:$0xff]   ;;  %v229_v12 = vlaneseq }
  0x48   :  { %988 = vmatprep.subr.bf16.mxu0 %v1322_v0  ;;  %1004 = vmatprep.mubr.msk.bf16.mxu0 %vm1323_vm0, %v1322_v0  ;;  %v1120_v3 = vld [vmem:[#allocation2 + $0x28] sm:$0xff]   ;;  %v1121_v4 = vld [vmem:[#allocation2 + $0x20] sm:$0xff]   ;;  %v1122_v5 = vld [vmem:[#allocation2 + $0x18] sm:$0xff]  }
  0x49   :  { %1008 = vmatprep.subr.bf16.mxu1 %v1322_v0  ;;  %1024 = vmatprep.mubr.msk.bf16.mxu1 %vm1323_vm0, %v1322_v0  ;;  %v1123_v6 = vld [vmem:[#allocation2 + $0x10] sm:$0xff]   ;;  %v1124_v7 = vld [vmem:[#allocation2 + $0x8] sm:$0xff]   ;;  %v1125_v8 = vld [vmem:[#allocation2] sm:$0xff]   ;;  %v1456_v13 = vand.u32 127, %v229_v12 }
  0x4a   :  { %989 = vmatpush3.bf16.msra.mxu0 %v1118_v1  ;;  %v1440_v9 = vld [vmem:[%s1560_s0] sm:$0xff]  ;;  %v1445_v10 = vld [vmem:[%s1560_s0 + $0x8] sm:$0xff]  ;;  %v1126_v20 = vld [vmem:[#allocation4 + $0x38] sm:$0xff]  }
  0x4b   :  { %990 = vmatprep.subr.bf16.mxu0 %v1322_v0  ;;  %v1450_v11 = vpack.c.bf16 %v1445_v10, %v1440_v9  ;;  %vm231_vm1 = vcmp.lt.s32.totalorder %v1456_v13, 16  ;;  %1009 = vmatpush3.bf16.msra.mxu1 %v1126_v20  ;;  %v1127_v21 = vld [vmem:[#allocation4 + $0x30] sm:$0xff]   ;;  %v1128_v22 = vld [vmem:[#allocation4 + $0x28] sm:$0xff]   ;;  %v1129_v33 = vld [vmem:[#allocation4 + $0x20] sm:$0xff]   ;;  %vm818_vm2 = vcmp.lt.s32.totalorder %v1456_v13, 32 }
  0x4c   :  { %1010 = vmatprep.subr.bf16.mxu1 %v1322_v0  ;;  %v1130_v34 = vld [vmem:[#allocation4 + $0x18] sm:$0xff]   ;;  %v1131_v35 = vld [vmem:[#allocation4 + $0x10] sm:$0xff]   ;;  %v1132_v36 = vld [vmem:[#allocation4 + $0x8] sm:$0xff]  }
  0x4d   :  { %v1133_v37 = vld [vmem:[#allocation4] sm:$0xff]   ;;  %v1136_v38 = vld [vmem:[#allocation7 + $0x38] sm:$0xff]   ;;  %v1138_v39 = vld [vmem:[#allocation7 + $0x30] sm:$0xff]  }
  0x4e   :  { %991 = vmatpush3.bf16.msra.mxu0 %v1119_v2  ;;  %v1140_v40 = vld [vmem:[#allocation7 + $0x28] sm:$0xff]   ;;  %v1142_v41 = vld [vmem:[#allocation7 + $0x20] sm:$0xff]   ;;  %v1144_v42 = vld [vmem:[#allocation7 + $0x18] sm:$0xff]  }
  0x4f   :  { %992 = vmatprep.subr.bf16.mxu0 %v1322_v0  ;;  %1011 = vmatpush3.bf16.msra.mxu1 %v1127_v21  ;;  %v1146_v43 = vld [vmem:[#allocation7 + $0x10] sm:$0xff]   ;;  %v1134_v50 = vld [vmem:[#allocation6 + $0x38] sm:$0xff]   ;;  %v1137_v53 = vld [vmem:[#allocation6 + $0x28] sm:$0xff]  }
  0x50   :  { %1012 = vmatprep.subr.bf16.mxu1 %v1322_v0  ;;  %v1135_v52 = vld [vmem:[#allocation6 + $0x30] sm:$0xff]   ;;  %v1139_v54 = vld [vmem:[#allocation6 + $0x20] sm:$0xff]   ;;  %v1141_v55 = vld [vmem:[#allocation6 + $0x18] sm:$0xff]  }
  0x51   :  { %v1143_v56 = vld [vmem:[#allocation6 + $0x10] sm:$0xff]   ;;  %v1145_v57 = vld [vmem:[#allocation6 + $0x8] sm:$0xff]   ;;  %v1147_v58 = vld [vmem:[#allocation6] sm:$0xff]  }
  0x52   :  { %993 = vmatpush3.bf16.msra.mxu0 %v1120_v3  ;;  %v1148_v59 = vld [vmem:[#allocation7 + $0x8] sm:$0xff]   ;;  %v1149_v60 = vld [vmem:[#allocation7] sm:$0xff]  }
  0x53   :  { %994 = vmatprep.subr.bf16.mxu0 %v1322_v0  ;;  %1013 = vmatpush3.bf16.msra.mxu1 %v1128_v22  ;;  %v1153_v12 = vld [vmem:[#allocation9 + $0x20] sm:$0xff]   ;;  %v1160_v20 = vld [vmem:[#allocation10 + $0x28] sm:$0xff]   ;;  %v1162_v22 = vld [vmem:[#allocation10 + $0x18] sm:$0xff]  }
  0x54   :  { %1014 = vmatprep.subr.bf16.mxu1 %v1322_v0  ;;  %v1161_v21 = vld [vmem:[#allocation10 + $0x20] sm:$0xff]  }
  0x55   :  { %v933_v13 = vld [vmem:[%s1569_s9] ss:$0 sm:$0xff] }
  0x56   :  { %995 = vmatpush3.bf16.msra.mxu0 %v1121_v4 }
  0x57   :  { %996 = vmatprep.subr.bf16.mxu0 %v1322_v0  ;;  %1015 = vmatpush3.bf16.msra.mxu1 %v1129_v33 }
  0x58   :  { %1016 = vmatprep.subr.bf16.mxu1 %v1322_v0 }
  0x5a   :  { %997 = vmatpush3.bf16.msra.mxu0 %v1122_v5 }
  0x5b   :  { %998 = vmatprep.subr.bf16.mxu0 %v1322_v0  ;;  %1017 = vmatpush3.bf16.msra.mxu1 %v1130_v34 }
  0x5c   :  { %1018 = vmatprep.subr.bf16.mxu1 %v1322_v0 }
  0x5e   :  { %999 = vmatpush3.bf16.msra.mxu0 %v1123_v6 }
  0x5f   :  { %1000 = vmatprep.subr.bf16.mxu0 %v1322_v0  ;;  %1019 = vmatpush3.bf16.msra.mxu1 %v1131_v35 }
  0x60   :  { %1020 = vmatprep.subr.bf16.mxu1 %v1322_v0 }
  0x62   :  { %1001 = vmatpush3.bf16.msra.mxu0 %v1124_v7  ;;  %v1150_v7 = vld [vmem:[#allocation9 + $0x38] sm:$0xff]  }
  0x63   :  { %1002 = vmatprep.subr.bf16.mxu0 %v1322_v0  ;;  %1021 = vmatpush3.bf16.msra.mxu1 %v1132_v36 }
  0x64   :  { %1022 = vmatprep.subr.bf16.mxu1 %v1322_v0 }
  0x66   :  { %1003 = vmatpush3.bf16.msra.mxu0 %v1125_v8  ;;  %v1151_v8 = vld [vmem:[#allocation9 + $0x30] sm:$0xff]  }
  0x67   :  { %1028 = vmatprep.subr.bf16.mxu0 %v1322_v0  ;;  %1023 = vmatpush3.bf16.msra.mxu1 %v1133_v37 }
  0x68   :  { %1048 = vmatprep.subr.bf16.mxu1 %v1322_v0 }
  0x69   :  { %1005 = vmatmul.mubr.bf16.vlgmr.msra.gmra.mxu0 %v1450_v11 }
  0x6a   :  { %1044 = vmatprep.mubr.msk.bf16.mxu0 %vm1323_vm0, %v1322_v0  ;;  %1029 = vmatpush3.bf16.msra.mxu0 %v1136_v38 }
  0x6b   :  { %1030 = vmatprep.subr.bf16.mxu0 %v1322_v0 }
  0x6e   :  { %1031 = vmatpush3.bf16.msra.mxu0 %v1138_v39 }
  0x6f   :  { %1032 = vmatprep.subr.bf16.mxu0 %v1322_v0 }
  0x72   :  { %1033 = vmatpush3.bf16.msra.mxu0 %v1140_v40 }
  0x73   :  { %1034 = vmatprep.subr.bf16.mxu0 %v1322_v0 }
  0x76   :  { %1035 = vmatpush3.bf16.msra.mxu0 %v1142_v41 }
  0x77   :  { %1036 = vmatprep.subr.bf16.mxu0 %v1322_v0 }
  0x7a   :  { %1037 = vmatpush3.bf16.msra.mxu0 %v1144_v42 }
  0x7b   :  { %1038 = vmatprep.subr.bf16.mxu0 %v1322_v0 }
  0x7e   :  { %1039 = vmatpush3.bf16.msra.mxu0 %v1146_v43 }
  0x7f   :  { %1040 = vmatprep.subr.bf16.mxu0 %v1322_v0 }
  0x82   :  { %1041 = vmatpush3.bf16.msra.mxu0 %v1148_v59 }
  0x83   :  { %1042 = vmatprep.subr.bf16.mxu0 %v1322_v0 }
  0x86   :  { %1043 = vmatpush3.bf16.msra.mxu0 %v1149_v60 }
  0x87   :  { %1068 = vmatprep.subr.bf16.mxu0 %v1322_v0 }
 0x129   :  { %v222_v14 = vpop.f32.mrf.mxu0 }
 0x12a   :  { %v232_v15 = vsel %vm231_vm1, %v222_v14, -1e+30  ;;  %v1154_v14 = vld [vmem:[#allocation9 + $0x18] sm:$0xff]  }
 0x12b   :  { %234 = vst [vmem:[%s1570_s10] sm:$0xff] %v232_v15  ;;  %236 = vmax.xlane.f32.xlu0 %v232_v15  ;;  %v1006_v16 = vpop.f32.mrf.mxu0 }
 0x12c   :  { %v1156_v16 = vld [vmem:[#allocation9 + $0x8] sm:$0xff]  }
 0x12d   :  { %v225_v17 = vpop.f32.mrf.mxu0 }
 0x12e   :  { %v233_v18 = vsel %vm231_vm1, %v225_v17, -1e+30  ;;  %v1157_v17 = vld [vmem:[#allocation9] sm:$0xff]  }
 0x12f   :  { %235 = vst [vmem:[%s1570_s10 + $0x8] sm:$0xff] %v233_v18  ;;  %238 = vmax.xlane.f32.xlu0 %v233_v18  ;;  %v1007_v19 = vpop.f32.mrf.mxu0 }
 0x130   :  { %v1159_v19 = vld [vmem:[#allocation10 + $0x30] sm:$0xff]  }
 0x1b4   :  { %v237_v23 = vpop.xlane.xlu0 %236 }
 0x1b5   :  { %v240_v24 = vsub.f32 %v232_v15, %v237_v23  ;;  %v1155_v15 = vld [vmem:[#allocation9 + $0x10] sm:$0xff]  }
 0x1b6   :  { %v1163_v23 = vld [vmem:[#allocation10 + $0x10] sm:$0xff]  }
 0x1b7   :  { %v242_v25 = vmul.f32 1.442695, %v240_v24 }
 0x1b8   :  { %v239_v26 = vpop.xlane.xlu0 %238 }
 0x1b9   :  { %1166 = vpow2.f32 %v242_v25  ;;  %v241_v27 = vsub.f32 %v233_v18, %v239_v26  ;;  %v1158_v18 = vld [vmem:[#allocation10 + $0x38] sm:$0xff]   ;;  %v913_v25 = vld [vmem:[%s1565_s5] ss:$0 sm:$0xff] }
 0x1bb   :  { %v244_v28 = vmul.f32 1.442695, %v241_v27 }
 0x1bd   :  { %1168 = vpow2.f32 %v244_v28 }
 0x1c6   :  { %v1167_v29 = vpop.eup %1166 }
 0x1c7   :  { %v246_v30 = vsel %vm231_vm1, %v1167_v29, 0.0 }
 0x1c8   :  { %248 = vadd.xlane.f32.xlu1 %v246_v30 }
 0x1ca   :  { %v1169_v31 = vpop.eup %1168 }
 0x1cb   :  { %v247_v32 = vsel %vm231_vm1, %v1169_v31, 0.0 }
 0x1cc   :  { %250 = vadd.xlane.f32.xlu1 %v247_v32 }
 0x251   :  { %v249_v44 = vpop.xlane.xlu1 %248 }
 0x252   :  { %1170 = vrcp.f32 %v249_v44 }
 0x255   :  { %v251_v45 = vpop.xlane.xlu1 %250 }
 0x256   :  { %1172 = vrcp.f32 %v251_v45 }
 0x25f   :  { %v1171_v46 = vpop.eup %1170 }
 0x260   :  { %v253_v47 = vmul.f32 %v1171_v46, %v246_v30 }
 0x262   :  { %256 = vst [vmem:[%s1571_s11] sm:$0xff] %v253_v47 }
 0x263   :  { %v1173_v48 = vpop.eup %1172 }
 0x264   :  { %v255_v49 = vmul.f32 %v1173_v48, %v247_v32 }
 0x266   :  { %257 = vst [vmem:[%s1571_s11 + $0x8] sm:$0xff] %v255_v49  ;;  %v258_v51 = vpack.c.bf16 %v255_v49, %v253_v47 }
 0x268   :  { %1025 = vmatmul.mubr.bf16.vlgmr.msra.gmra.mxu1 %v258_v51  ;;  %v1165_v51 = vld [vmem:[#allocation10] sm:$0xff]  }
 0x269   :  { %1049 = vmatpush3.bf16.msra.mxu1 %v1134_v50  ;;  %1064 = vmatprep.mubr.msk.bf16.mxu1 %vm1323_vm0, %v1322_v0  ;;  %v1164_v50 = vld [vmem:[#allocation10 + $0x8] sm:$0xff]  }
 0x26a   :  { %1050 = vmatprep.subr.bf16.mxu1 %v1322_v0 }
 0x26d   :  { %1051 = vmatpush3.bf16.msra.mxu1 %v1135_v52 }
 0x26e   :  { %1052 = vmatprep.subr.bf16.mxu1 %v1322_v0 }
 0x271   :  { %1053 = vmatpush3.bf16.msra.mxu1 %v1137_v53 }
 0x272   :  { %1054 = vmatprep.subr.bf16.mxu1 %v1322_v0 }
 0x275   :  { %1055 = vmatpush3.bf16.msra.mxu1 %v1139_v54 }
 0x276   :  { %1056 = vmatprep.subr.bf16.mxu1 %v1322_v0 }
 0x279   :  { %1057 = vmatpush3.bf16.msra.mxu1 %v1141_v55 }
 0x27a   :  { %1058 = vmatprep.subr.bf16.mxu1 %v1322_v0 }
 0x27d   :  { %1059 = vmatpush3.bf16.msra.mxu1 %v1143_v56 }
 0x27e   :  { %1060 = vmatprep.subr.bf16.mxu1 %v1322_v0 }
 0x281   :  { %1061 = vmatpush3.bf16.msra.mxu1 %v1145_v57 }
 0x282   :  { %1062 = vmatprep.subr.bf16.mxu1 %v1322_v0 }
 0x285   :  { %1063 = vmatpush3.bf16.msra.mxu1 %v1147_v58 }
 0x286   :  { %1088 = vmatprep.subr.bf16.mxu1 %v1322_v0 }
 0x288   :  { %1065 = vmatmul.mubr.bf16.vlgmr.msra.gmra.mxu1 %v1450_v11  ;;  %v1152_v11 = vld [vmem:[#allocation9 + $0x28] sm:$0xff]  }
 0x289   :  { %1104 = vmatprep.mubr.msk.bf16.mxu1 %vm1323_vm0, %v1322_v0  ;;  %1089 = vmatpush3.bf16.msra.mxu1 %v1158_v18 }
 0x28a   :  { %1090 = vmatprep.subr.bf16.mxu1 %v1322_v0 }
 0x28d   :  { %1091 = vmatpush3.bf16.msra.mxu1 %v1159_v19 }
 0x28e   :  { %1092 = vmatprep.subr.bf16.mxu1 %v1322_v0 }
 0x291   :  { %1093 = vmatpush3.bf16.msra.mxu1 %v1160_v20 }
 0x292   :  { %1094 = vmatprep.subr.bf16.mxu1 %v1322_v0 }
 0x295   :  { %1095 = vmatpush3.bf16.msra.mxu1 %v1161_v21  ;;  %v932_v21 = vld [vmem:[%s1568_s8] ss:$0 sm:$0xff] }
 0x296   :  { %1096 = vmatprep.subr.bf16.mxu1 %v1322_v0 }
 0x299   :  { %1097 = vmatpush3.bf16.msra.mxu1 %v1162_v22 }
 0x29a   :  { %1098 = vmatprep.subr.bf16.mxu1 %v1322_v0 }
 0x29d   :  { %1099 = vmatpush3.bf16.msra.mxu1 %v1163_v23 }
 0x29e   :  { %1100 = vmatprep.subr.bf16.mxu1 %v1322_v0 }
 0x2a1   :  { %1101 = vmatpush3.bf16.msra.mxu1 %v1164_v50 }
 0x2a2   :  { %1102 = vmatprep.subr.bf16.mxu1 %v1322_v0 }
 0x2a5   :  { %1103 = vmatpush3.bf16.msra.mxu1 %v1165_v51 }
 0x328   :  { %v1508_v61 = vpop.f32.mrf.mxu1 }
 0x32a   :  { %v1026_v62 = vpop.f32.mrf.mxu1 }
 0x32c   :  { %v1510_v63 = vpop.f32.mrf.mxu1 }
 0x32d   :  { %v380_v1 = vpack.c.bf16 %v1510_v63, %v1508_v61 }
 0x32e   :  { %v1027_v2 = vpop.f32.mrf.mxu1 }
 0x32f   :  { %1045 = vmatmul.mubr.bf16.vlgmr.msra.gmra.mxu0 %v380_v1 }
 0x330   :  { %1084 = vmatprep.mubr.msk.bf16.mxu0 %vm1323_vm0, %v1322_v0  ;;  %1069 = vmatpush3.bf16.msra.mxu0 %v1150_v7 }
 0x331   :  { %1070 = vmatprep.subr.bf16.mxu0 %v1322_v0 }
 0x334   :  { %1071 = vmatpush3.bf16.msra.mxu0 %v1151_v8 }
 0x335   :  { %1072 = vmatprep.subr.bf16.mxu0 %v1322_v0 }
 0x338   :  { %1073 = vmatpush3.bf16.msra.mxu0 %v1152_v11 }
 0x339   :  { %1074 = vmatprep.subr.bf16.mxu0 %v1322_v0 }
 0x33c   :  { %1075 = vmatpush3.bf16.msra.mxu0 %v1153_v12 }
 0x33d   :  { %1076 = vmatprep.subr.bf16.mxu0 %v1322_v0 }
 0x340   :  { %1077 = vmatpush3.bf16.msra.mxu0 %v1154_v14 }
 0x341   :  { %1078 = vmatprep.subr.bf16.mxu0 %v1322_v0 }
 0x344   :  { %1079 = vmatpush3.bf16.msra.mxu0 %v1155_v15 }
 0x345   :  { %1080 = vmatprep.subr.bf16.mxu0 %v1322_v0 }
 0x348   :  { %v568_v3 = vpop.f32.mrf.mxu1  ;;  %1081 = vmatpush3.bf16.msra.mxu0 %v1156_v16 }
 0x349   :  { %1082 = vmatprep.subr.bf16.mxu0 %v1322_v0 }
 0x34a   :  { %v1066_v4 = vpop.f32.mrf.mxu1 }
 0x34c   :  { %v571_v5 = vpop.f32.mrf.mxu1  ;;  %1083 = vmatpush3.bf16.msra.mxu0 %v1157_v17 }
 0x34e   :  { %v1067_v6 = vpop.f32.mrf.mxu1 }
 0x3ef   :  { %v479_v24 = vpop.f32.mrf.mxu0 }
 0x3f0   :  { %v569_v26 = vadd.f32 %v568_v3, %v479_v24 }
 0x3f1   :  { %v1046_v27 = vpop.f32.mrf.mxu0 }
 0x3f2   :  { %v582_v28 = vadd.f32 %v913_v25, %v569_v26 }
 0x3f3   :  { %v482_v29 = vpop.f32.mrf.mxu0 }
 0x3f4   :  { %v914_v30 = vmul.f32 -1.442695, %v582_v28  ;;  %v572_v31 = vadd.f32 %v571_v5, %v482_v29 }
 0x3f5   :  { %v1047_v32 = vpop.f32.mrf.mxu0 }
 0x3f6   :  { %1174 = vpow2.f32 %v914_v30  ;;  %v583_v33 = vadd.f32 %v913_v25, %v572_v31 }
 0x3f8   :  { %v915_v34 = vmul.f32 -1.442695, %v583_v33 }
 0x3fa   :  { %1176 = vpow2.f32 %v915_v34 }
 0x403   :  { %v1175_v35 = vpop.eup %1174 }
 0x404   :  { %v590_v36 = vadd.f32 1.0, %v1175_v35 }
 0x406   :  { %1178 = vrcp.f32 %v590_v36 }
 0x407   :  { %v1177_v37 = vpop.eup %1176 }
 0x408   :  { %v591_v38 = vadd.f32 1.0, %v1177_v37 }
 0x40a   :  { %1180 = vrcp.f32 %v591_v38 }
 0x413   :  { %v1179_v39 = vpop.eup %1178 }
 0x414   :  { %v598_v40 = vsub.f32 1.0, %v1179_v39  ;;  %v596_v44 = vmul.f32 %v1179_v39, %v1440_v9 }
 0x416   :  { %v600_v43 = vmul.f32 %v598_v40, %v1508_v61 }
 0x417   :  { %v1181_v41 = vpop.eup %1180 }
 0x418   :  { %v599_v42 = vsub.f32 1.0, %v1181_v41  ;;  %v597_v45 = vmul.f32 %v1181_v41, %v1445_v10  ;;  %v602_v47 = vadd.f32 %v600_v43, %v596_v44 }
 0x41a   :  { %v601_v46 = vmul.f32 %v599_v42, %v1510_v63 }
 0x41c   :  { %v603_v48 = vadd.f32 %v601_v46, %v597_v45 }
 0x41e   :  { %v604_v49 = vpack.c.bf16 %v603_v48, %v602_v47 }
 0x420   :  { %1085 = vmatmul.mubr.bf16.vlgmr.msra.gmra.mxu0 %v604_v49 }
 0x4e0   :  { %v703_v52 = vpop.f32.mrf.mxu0 }
 0x4e1   :  { %v710_v55 = vmax.f32 %v703_v52, 0.0 }
 0x4e2   :  { %v1086_v53 = vpop.f32.mrf.mxu0 }
 0x4e4   :  { %v706_v54 = vpop.f32.mrf.mxu0 }
 0x4e5   :  { %v711_v56 = vmax.f32 %v706_v54, 0.0 }
 0x4e6   :  { %v1087_v57 = vpop.f32.mrf.mxu0 }
 0x4e7   :  { %v712_v58 = vpack.c.bf16 %v711_v56, %v710_v55 }
 0x4e9   :  { %1105 = vmatmul.mubr.bf16.vlgmr.msra.gmra.mxu1 %v712_v58 }
 0x5a9   :  { %v811_v59 = vpop.f32.mrf.mxu1 }
 0x5aa   :  { %v812_v60 = vadd.f32 %v811_v59, %v1440_v9 }
 0x5ab   :  { %v1106_v61 = vpop.f32.mrf.mxu1 }
 0x5ac   :  { %v819_v62 = vsel %vm818_vm2, %v812_v60, 0.0 }
 0x5ad   :  { %821 = vadd.xlane.f32.xlu0 %v819_v62  ;;  %v814_v0 = vpop.f32.mrf.mxu1 }
 0x5ae   :  { %v815_v63 = vadd.f32 %v814_v0, %v1445_v10 }
 0x5af   :  { %v1107_v1 = vpop.f32.mrf.mxu1 }
 0x5b0   :  { %v820_v2 = vsel %vm818_vm2, %v815_v63, 0.0 }
 0x5b1   :  { %823 = vadd.xlane.f32.xlu1 %v820_v2 }
 0x636   :  { %v822_v3 = vpop.xlane.xlu0 %821 }
 0x637   :  { %v825_v4 = vmul.f32 0.03125, %v822_v3 }
 0x639   :  { %v827_v5 = vsub.f32 %v812_v60, %v825_v4 }
 0x63a   :  { %v824_v6 = vpop.xlane.xlu1 %823 }
 0x63b   :  { %v826_v7 = vmul.f32 0.03125, %v824_v6  ;;  %v829_v9 = vsel %vm818_vm2, %v827_v5, 0.0 }
 0x63c   :  { %v831_v8 = vmul.f32 %v829_v9, %v829_v9 }
 0x63d   :  { %v828_v11 = vsub.f32 %v815_v63, %v826_v7 }
 0x63e   :  { %833 = vadd.xlane.f32.xlu0 %v831_v8 }
 0x63f   :  { %v830_v12 = vsel %vm818_vm2, %v828_v11, 0.0 }
 0x640   :  { %v832_v10 = vmul.f32 %v830_v12, %v830_v12 }
 0x642   :  { %835 = vadd.xlane.f32.xlu1 %v832_v10 }
 0x6c7   :  { %v834_v14 = vpop.xlane.xlu0 %833 }
 0x6c8   :  { %v837_v15 = vmul.f32 0.03125, %v834_v14 }
 0x6ca   :  { %v839_v16 = vadd.f32 1e-05, %v837_v15 }
 0x6cb   :  { %v836_v17 = vpop.xlane.xlu1 %835 }
 0x6cc   :  { %1182 = vrsqrt.f32 %v839_v16  ;;  %v838_v18 = vmul.f32 0.03125, %v836_v17 }
 0x6ce   :  { %v840_v19 = vadd.f32 1e-05, %v838_v18 }
 0x6d0   :  { %1184 = vrsqrt.f32 %v840_v19 }
 0x6d9   :  { %v1183_v20 = vpop.eup %1182 }
 0x6da   :  { %v843_v22 = vmul.f32 %v1183_v20, %v829_v9 }
 0x6dc   :  { %v852_v23 = vmul.f32 %v932_v21, %v843_v22 }
 0x6dd   :  { %v1185_v24 = vpop.eup %1184 }
 0x6de   :  { %v861_v25 = vadd.f32 %v933_v13, %v852_v23  ;;  %v844_v26 = vmul.f32 %v1185_v24, %v830_v12 }
 0x6e0   :  { %863 = vst [vmem:[%s1572_s12] sm:$0xff] %v861_v25  ;;  %v853_v27 = vmul.f32 %v932_v21, %v844_v26 }
 0x6e2   :  { %v862_v28 = vadd.f32 %v933_v13, %v853_v27 }
 0x6e4   :  { %864 = vst [vmem:[%s1572_s12 + $0x8] sm:$0xff] %v862_v28 }
 0x6e5   :  { %877 = vsyncpa [#allocation3], 1 }
 0x6e6   :  { %878 = vsyncpa [#allocation5], 1 }
 0x6e7   :  { %879 = vsyncpa [#allocation8], 1 }
 0x6e8   :  { %880 = vsyncpa [#allocation11], 1 }

// kernel: _hier_rel_core.1
= control target key start
LH: loop header
LB: loop body
LE: loop exit
PB: predicated region body
PF: predicated region fallthrough
CT: control target
= control target key end

     0   :  { %18 = vsyncpa [#allocation3], 0  ;;  %s1560_s0 = inlined_call_operand.vmem [shape: f32[16,128], index: 0, kind: input, shape index: {}]   ;;  %s1561_s1 = inlined_call_operand.hbm [shape: bf16[128,128], index: 1, kind: input, shape index: {}]   ;;  %s1562_s2 = inlined_call_operand.hbm [shape: bf16[128,128], index: 2, kind: input, shape index: {}]   ;;  %s1563_s3 = inlined_call_operand.hbm [shape: bf16[128,128], index: 3, kind: input, shape index: {}]   ;;  %s1564_s4 = inlined_call_operand.hbm [shape: bf16[128,128], index: 4, kind: input, shape index: {}]   ;;  %s1565_s5 = inlined_call_operand.vmem [shape: f32[1,128], index: 5, kind: input, shape index: {}]   ;;  %s1566_s6 = inlined_call_operand.hbm [shape: bf16[128,128], index: 6, kind: input, shape index: {}]   ;;  %s1567_s7 = inlined_call_operand.hbm [shape: bf16[128,128], index: 7, kind: input, shape index: {}]   ;;  %s1568_s8 = inlined_call_operand.vmem [shape: f32[1,128], index: 8, kind: input, shape index: {}]   ;;  %s1569_s9 = inlined_call_operand.vmem [shape: f32[1,128], index: 9, kind: input, shape index: {}]   ;;  %s1570_s10 = inlined_call_operand.vmem [shape: f32[16,128], index: 10, kind: output, shape index: {0}]   ;;  %s1571_s11 = inlined_call_operand.vmem [shape: f32[16,128], index: 11, kind: output, shape index: {1}]   ;;  %s1572_s12 = inlined_call_operand.vmem [shape: f32[16,128], index: 12, kind: output, shape index: {2}]  }
   0x1   :  { %19 = vsyncpa [#allocation5], 0 }
   0x2   :  { %20 = vsyncpa [#allocation8], 0 }
   0x3   :  { %21 = vsyncpa [#allocation11], 0  ;;  %s1314_s21 = smov [#allocation4]   ;;  %s1315_s23 = smov [#allocation7]  }
   0x4   :  { %s41_s22 = sshll.u32 %s1314_s21, 4  ;;  %s65_s24 = sshll.u32 %s1315_s23, 4  ;;  %s42_s22 = int_to_ptr.vmem [resolvable:$true] %s41_s22  ;;  %s66_s24 = int_to_ptr.vmem [resolvable:$true] %s65_s24 }
   0x5   :  { %s1194_s25 = scalar_lea.vmem %s42_s22, 1024  ;;  %p1199_p1 = scmp.lt.s32.totalorder %s42_s22, %s42_s22 }
   0x6   :  { %p1195_p0 = scmp.ne.s32.totalorder %s42_s22, %s1194_s25  ;;  %p1200_p2 = scmp.lt.s32.totalorder %s1194_s25, %s1194_s25 }
   0x8   :  { %p1201_p3 = por %p1200_p2, %p1199_p1 }
   0xa   :  { %p1202_p4 = pnand %p1201_p3, %p1195_p0 }
   0xc   :  { %1205 = shalt.err (!%p1202_p4)
}
   0xd   :  { %s1316_s26 = smov 64   ;;  %s1317_s27 = smov 4  }
   0xe   :  { %47 = dma.hbm_to_vmem [thread:$0]  %s1562_s2, 1024, %s42_s22, [#allocation5], %s1316_s26, %s1316_s26, %s1317_s27  }
   0xf   :  { %s1214_s30 = scalar_lea.vmem %s66_s24, 1024  ;;  %p1219_p6 = scmp.lt.s32.totalorder %s66_s24, %s66_s24 }
  0x10   :  { %p1215_p5 = scmp.ne.s32.totalorder %s66_s24, %s1214_s30  ;;  %p1220_p7 = scmp.lt.s32.totalorder %s1214_s30, %s1214_s30 }
  0x12   :  { %p1221_p8 = por %p1220_p7, %p1219_p6 }
  0x14   :  { %p1222_p9 = pnand %p1221_p8, %p1215_p5 }
  0x16   :  { %1225 = shalt.err (!%p1222_p9)
}
  0x17   :  { %71 = dma.hbm_to_vmem [thread:$0]  %s1564_s4, 1024, %s66_s24, [#allocation8], %s1316_s26, %s1316_s26, %s1317_s27  }
  0x18   :  { %s1318_s15 = smov [#allocation2]   ;;  %s1319_s17 = smov [#allocation6]  }
  0x19   :  { %s29_s16 = sshll.u32 %s1318_s15, 4  ;;  %s53_s18 = sshll.u32 %s1319_s17, 4  ;;  %s30_s16 = int_to_ptr.vmem [resolvable:$true] %s29_s16  ;;  %s54_s18 = int_to_ptr.vmem [resolvable:$true] %s53_s18 }
  0x1a   :  { %s1234_s2 = scalar_lea.vmem %s30_s16, 1024  ;;  %p1239_p11 = scmp.lt.s32.totalorder %s30_s16, %s30_s16 }
  0x1b   :  { %p1235_p10 = scmp.ne.s32.totalorder %s30_s16, %s1234_s2  ;;  %p1240_p12 = scmp.lt.s32.totalorder %s1234_s2, %s1234_s2 }
  0x1d   :  { %p1241_p13 = por %p1240_p12, %p1239_p11 }
  0x1f   :  { %p1242_p0 = pnand %p1241_p13, %p1235_p10 }
  0x21   :  { %1245 = shalt.err (!%p1242_p0)
}
  0x22   :  { %35 = dma.hbm_to_vmem [thread:$0]  %s1561_s1, 1024, %s30_s16, [#allocation3], %s1316_s26, %s1316_s26, %s1317_s27  }
  0x23   :  { %s1254_s4 = scalar_lea.vmem %s54_s18, 1024  ;;  %p1259_p2 = scmp.lt.s32.totalorder %s54_s18, %s54_s18 }
  0x24   :  { %p1255_p1 = scmp.ne.s32.totalorder %s54_s18, %s1254_s4  ;;  %p1260_p3 = scmp.lt.s32.totalorder %s1254_s4, %s1254_s4 }
  0x26   :  { %p1261_p4 = por %p1260_p3, %p1259_p2 }
  0x28   :  { %p1262_p5 = pnand %p1261_p4, %p1255_p1 }
  0x2a   :  { %1265 = shalt.err (!%p1262_p5)
}
  0x2b   :  { %59 = dma.hbm_to_vmem [thread:$0]  %s1563_s3, 1024, %s54_s18, [#allocation5], %s1316_s26, %s1316_s26, %s1317_s27  }
  0x2c   :  { %s1320_s23 = smov [#allocation9]   ;;  %s1321_s25 = smov [#allocation10]  }
  0x2d   :  { %s79_s24 = sshll.u32 %s1320_s23, 4  ;;  %s91_s28 = sshll.u32 %s1321_s25, 4  ;;  %s80_s24 = int_to_ptr.vmem [resolvable:$true] %s79_s24  ;;  %s92_s28 = int_to_ptr.vmem [resolvable:$true] %s91_s28 }
  0x2e   :  { %s1274_s1 = scalar_lea.vmem %s80_s24, 1024  ;;  %p1279_p7 = scmp.lt.s32.totalorder %s80_s24, %s80_s24 }
  0x2f   :  { %p1275_p6 = scmp.ne.s32.totalorder %s80_s24, %s1274_s1  ;;  %p1280_p8 = scmp.lt.s32.totalorder %s1274_s1, %s1274_s1 }
  0x31   :  { %p1281_p9 = por %p1280_p8, %p1279_p7 }
  0x33   :  { %p1282_p10 = pnand %p1281_p9, %p1275_p6 }
  0x35   :  { %1285 = shalt.err (!%p1282_p10)
}
  0x36   :  { %85 = dma.hbm_to_vmem [thread:$0]  %s1566_s6, 1024, %s80_s24, [#allocation8], %s1316_s26, %s1316_s26, %s1317_s27  }
  0x37   :  { %s1294_s3 = scalar_lea.vmem %s92_s28, 1024  ;;  %p1299_p12 = scmp.lt.s32.totalorder %s92_s28, %s92_s28 }
  0x38   :  { %p1295_p11 = scmp.ne.s32.totalorder %s92_s28, %s1294_s3  ;;  %p1300_p13 = scmp.lt.s32.totalorder %s1294_s3, %s1294_s3 }
  0x3a   :  { %p1301_p0 = por %p1300_p13, %p1299_p12 }
  0x3c   :  { %p1302_p1 = pnand %p1301_p0, %p1295_p11 }
  0x3e   :  { %1305 = shalt.err (!%p1302_p1)
}
  0x3f   :  { %97 = dma.hbm_to_vmem [thread:$0]  %s1567_s7, 1024, %s92_s28, [#allocation11], %s1316_s26, %s1316_s26, %s1317_s27  }
  0x40   :  { %1306 = dma.done.wait [#allocation3], 1024  }
  0x41   :  { %1307 = vsyncadd [#allocation3], 4294966272 }
  0x42   :  { %1308 = dma.done.wait [#allocation5], 2048  }
  0x43   :  { %1309 = vsyncadd [#allocation5], 4294965248 }
  0x44   :  { %1310 = dma.done.wait [#allocation8], 2048  }
  0x45   :  { %1311 = vsyncadd [#allocation8], 4294965248 }
  0x46   :  { %1312 = dma.done.wait [#allocation11], 1024  }
  0x47   :  { %1313 = vsyncadd [#allocation11], 4294966272  ;;  %v1322_v0 = vmov 0.0   ;;  %vm1323_vm0 = vmmov 0   ;;  %v1118_v1 = vld [vmem:[#allocation2 + $0x38] sm:$0xff]   ;;  %v1119_v2 = vld [vmem:[#allocation2 + $0x30] sm:$0xff]   ;;  %v229_v12 = vlaneseq }
  0x48   :  { %988 = vmatprep.subr.bf16.mxu0 %v1322_v0  ;;  %1004 = vmatprep.mubr.msk.bf16.mxu0 %vm1323_vm0, %v1322_v0  ;;  %v1120_v3 = vld [vmem:[#allocation2 + $0x28] sm:$0xff]   ;;  %v1121_v4 = vld [vmem:[#allocation2 + $0x20] sm:$0xff]   ;;  %v1122_v5 = vld [vmem:[#allocation2 + $0x18] sm:$0xff]  }
  0x49   :  { %1008 = vmatprep.subr.bf16.mxu1 %v1322_v0  ;;  %1024 = vmatprep.mubr.msk.bf16.mxu1 %vm1323_vm0, %v1322_v0  ;;  %v1123_v6 = vld [vmem:[#allocation2 + $0x10] sm:$0xff]   ;;  %v1124_v7 = vld [vmem:[#allocation2 + $0x8] sm:$0xff]   ;;  %v1125_v8 = vld [vmem:[#allocation2] sm:$0xff]   ;;  %v1456_v13 = vand.u32 127, %v229_v12 }
  0x4a   :  { %989 = vmatpush3.bf16.msra.mxu0 %v1118_v1  ;;  %v1440_v9 = vld [vmem:[%s1560_s0] sm:$0xff]  ;;  %v1445_v10 = vld [vmem:[%s1560_s0 + $0x8] sm:$0xff]  ;;  %v1126_v20 = vld [vmem:[#allocation4 + $0x38] sm:$0xff]  }
  0x4b   :  { %990 = vmatprep.subr.bf16.mxu0 %v1322_v0  ;;  %v1450_v11 = vpack.c.bf16 %v1445_v10, %v1440_v9  ;;  %vm231_vm1 = vcmp.lt.s32.totalorder %v1456_v13, 16  ;;  %1009 = vmatpush3.bf16.msra.mxu1 %v1126_v20  ;;  %v1127_v21 = vld [vmem:[#allocation4 + $0x30] sm:$0xff]   ;;  %v1128_v22 = vld [vmem:[#allocation4 + $0x28] sm:$0xff]   ;;  %v1129_v33 = vld [vmem:[#allocation4 + $0x20] sm:$0xff]   ;;  %vm818_vm2 = vcmp.lt.s32.totalorder %v1456_v13, 32 }
  0x4c   :  { %1010 = vmatprep.subr.bf16.mxu1 %v1322_v0  ;;  %v1130_v34 = vld [vmem:[#allocation4 + $0x18] sm:$0xff]   ;;  %v1131_v35 = vld [vmem:[#allocation4 + $0x10] sm:$0xff]   ;;  %v1132_v36 = vld [vmem:[#allocation4 + $0x8] sm:$0xff]  }
  0x4d   :  { %v1133_v37 = vld [vmem:[#allocation4] sm:$0xff]   ;;  %v1136_v38 = vld [vmem:[#allocation7 + $0x38] sm:$0xff]   ;;  %v1138_v39 = vld [vmem:[#allocation7 + $0x30] sm:$0xff]  }
  0x4e   :  { %991 = vmatpush3.bf16.msra.mxu0 %v1119_v2  ;;  %v1140_v40 = vld [vmem:[#allocation7 + $0x28] sm:$0xff]   ;;  %v1142_v41 = vld [vmem:[#allocation7 + $0x20] sm:$0xff]   ;;  %v1144_v42 = vld [vmem:[#allocation7 + $0x18] sm:$0xff]  }
  0x4f   :  { %992 = vmatprep.subr.bf16.mxu0 %v1322_v0  ;;  %1011 = vmatpush3.bf16.msra.mxu1 %v1127_v21  ;;  %v1146_v43 = vld [vmem:[#allocation7 + $0x10] sm:$0xff]   ;;  %v1134_v50 = vld [vmem:[#allocation6 + $0x38] sm:$0xff]   ;;  %v1137_v53 = vld [vmem:[#allocation6 + $0x28] sm:$0xff]  }
  0x50   :  { %1012 = vmatprep.subr.bf16.mxu1 %v1322_v0  ;;  %v1135_v52 = vld [vmem:[#allocation6 + $0x30] sm:$0xff]   ;;  %v1139_v54 = vld [vmem:[#allocation6 + $0x20] sm:$0xff]   ;;  %v1141_v55 = vld [vmem:[#allocation6 + $0x18] sm:$0xff]  }
  0x51   :  { %v1143_v56 = vld [vmem:[#allocation6 + $0x10] sm:$0xff]   ;;  %v1145_v57 = vld [vmem:[#allocation6 + $0x8] sm:$0xff]   ;;  %v1147_v58 = vld [vmem:[#allocation6] sm:$0xff]  }
  0x52   :  { %993 = vmatpush3.bf16.msra.mxu0 %v1120_v3  ;;  %v1148_v59 = vld [vmem:[#allocation7 + $0x8] sm:$0xff]   ;;  %v1149_v60 = vld [vmem:[#allocation7] sm:$0xff]  }
  0x53   :  { %994 = vmatprep.subr.bf16.mxu0 %v1322_v0  ;;  %1013 = vmatpush3.bf16.msra.mxu1 %v1128_v22  ;;  %v1153_v12 = vld [vmem:[#allocation9 + $0x20] sm:$0xff]   ;;  %v1160_v20 = vld [vmem:[#allocation10 + $0x28] sm:$0xff]   ;;  %v1162_v22 = vld [vmem:[#allocation10 + $0x18] sm:$0xff]  }
  0x54   :  { %1014 = vmatprep.subr.bf16.mxu1 %v1322_v0  ;;  %v1161_v21 = vld [vmem:[#allocation10 + $0x20] sm:$0xff]  }
  0x55   :  { %v933_v13 = vld [vmem:[%s1569_s9] ss:$0 sm:$0xff] }
  0x56   :  { %995 = vmatpush3.bf16.msra.mxu0 %v1121_v4 }
  0x57   :  { %996 = vmatprep.subr.bf16.mxu0 %v1322_v0  ;;  %1015 = vmatpush3.bf16.msra.mxu1 %v1129_v33 }
  0x58   :  { %1016 = vmatprep.subr.bf16.mxu1 %v1322_v0 }
  0x5a   :  { %997 = vmatpush3.bf16.msra.mxu0 %v1122_v5 }
  0x5b   :  { %998 = vmatprep.subr.bf16.mxu0 %v1322_v0  ;;  %1017 = vmatpush3.bf16.msra.mxu1 %v1130_v34 }
  0x5c   :  { %1018 = vmatprep.subr.bf16.mxu1 %v1322_v0 }
  0x5e   :  { %999 = vmatpush3.bf16.msra.mxu0 %v1123_v6 }
  0x5f   :  { %1000 = vmatprep.subr.bf16.mxu0 %v1322_v0  ;;  %1019 = vmatpush3.bf16.msra.mxu1 %v1131_v35 }
  0x60   :  { %1020 = vmatprep.subr.bf16.mxu1 %v1322_v0 }
  0x62   :  { %1001 = vmatpush3.bf16.msra.mxu0 %v1124_v7  ;;  %v1150_v7 = vld [vmem:[#allocation9 + $0x38] sm:$0xff]  }
  0x63   :  { %1002 = vmatprep.subr.bf16.mxu0 %v1322_v0  ;;  %1021 = vmatpush3.bf16.msra.mxu1 %v1132_v36 }
  0x64   :  { %1022 = vmatprep.subr.bf16.mxu1 %v1322_v0 }
  0x66   :  { %1003 = vmatpush3.bf16.msra.mxu0 %v1125_v8  ;;  %v1151_v8 = vld [vmem:[#allocation9 + $0x30] sm:$0xff]  }
  0x67   :  { %1028 = vmatprep.subr.bf16.mxu0 %v1322_v0  ;;  %1023 = vmatpush3.bf16.msra.mxu1 %v1133_v37 }
  0x68   :  { %1048 = vmatprep.subr.bf16.mxu1 %v1322_v0 }
  0x69   :  { %1005 = vmatmul.mubr.bf16.vlgmr.msra.gmra.mxu0 %v1450_v11 }
  0x6a   :  { %1044 = vmatprep.mubr.msk.bf16.mxu0 %vm1323_vm0, %v1322_v0  ;;  %1029 = vmatpush3.bf16.msra.mxu0 %v1136_v38 }
  0x6b   :  { %1030 = vmatprep.subr.bf16.mxu0 %v1322_v0 }
  0x6e   :  { %1031 = vmatpush3.bf16.msra.mxu0 %v1138_v39 }
  0x6f   :  { %1032 = vmatprep.subr.bf16.mxu0 %v1322_v0 }
  0x72   :  { %1033 = vmatpush3.bf16.msra.mxu0 %v1140_v40 }
  0x73   :  { %1034 = vmatprep.subr.bf16.mxu0 %v1322_v0 }
  0x76   :  { %1035 = vmatpush3.bf16.msra.mxu0 %v1142_v41 }
  0x77   :  { %1036 = vmatprep.subr.bf16.mxu0 %v1322_v0 }
  0x7a   :  { %1037 = vmatpush3.bf16.msra.mxu0 %v1144_v42 }
  0x7b   :  { %1038 = vmatprep.subr.bf16.mxu0 %v1322_v0 }
  0x7e   :  { %1039 = vmatpush3.bf16.msra.mxu0 %v1146_v43 }
  0x7f   :  { %1040 = vmatprep.subr.bf16.mxu0 %v1322_v0 }
  0x82   :  { %1041 = vmatpush3.bf16.msra.mxu0 %v1148_v59 }
  0x83   :  { %1042 = vmatprep.subr.bf16.mxu0 %v1322_v0 }
  0x86   :  { %1043 = vmatpush3.bf16.msra.mxu0 %v1149_v60 }
  0x87   :  { %1068 = vmatprep.subr.bf16.mxu0 %v1322_v0 }
 0x129   :  { %v222_v14 = vpop.f32.mrf.mxu0 }
 0x12a   :  { %v232_v15 = vsel %vm231_vm1, %v222_v14, -1e+30  ;;  %v1154_v14 = vld [vmem:[#allocation9 + $0x18] sm:$0xff]  }
 0x12b   :  { %234 = vst [vmem:[%s1570_s10] sm:$0xff] %v232_v15  ;;  %236 = vmax.xlane.f32.xlu0 %v232_v15  ;;  %v1006_v16 = vpop.f32.mrf.mxu0 }
 0x12c   :  { %v1156_v16 = vld [vmem:[#allocation9 + $0x8] sm:$0xff]  }
 0x12d   :  { %v225_v17 = vpop.f32.mrf.mxu0 }
 0x12e   :  { %v233_v18 = vsel %vm231_vm1, %v225_v17, -1e+30  ;;  %v1157_v17 = vld [vmem:[#allocation9] sm:$0xff]  }
 0x12f   :  { %235 = vst [vmem:[%s1570_s10 + $0x8] sm:$0xff] %v233_v18  ;;  %238 = vmax.xlane.f32.xlu0 %v233_v18  ;;  %v1007_v19 = vpop.f32.mrf.mxu0 }
 0x130   :  { %v1159_v19 = vld [vmem:[#allocation10 + $0x30] sm:$0xff]  }
 0x1b4   :  { %v237_v23 = vpop.xlane.xlu0 %236 }
 0x1b5   :  { %v240_v24 = vsub.f32 %v232_v15, %v237_v23  ;;  %v1155_v15 = vld [vmem:[#allocation9 + $0x10] sm:$0xff]  }
 0x1b6   :  { %v1163_v23 = vld [vmem:[#allocation10 + $0x10] sm:$0xff]  }
 0x1b7   :  { %v242_v25 = vmul.f32 1.442695, %v240_v24 }
 0x1b8   :  { %v239_v26 = vpop.xlane.xlu0 %238 }
 0x1b9   :  { %1166 = vpow2.f32 %v242_v25  ;;  %v241_v27 = vsub.f32 %v233_v18, %v239_v26  ;;  %v1158_v18 = vld [vmem:[#allocation10 + $0x38] sm:$0xff]   ;;  %v913_v25 = vld [vmem:[%s1565_s5] ss:$0 sm:$0xff] }
 0x1bb   :  { %v244_v28 = vmul.f32 1.442695, %v241_v27 }
 0x1bd   :  { %1168 = vpow2.f32 %v244_v28 }
 0x1c6   :  { %v1167_v29 = vpop.eup %1166 }
 0x1c7   :  { %v246_v30 = vsel %vm231_vm1, %v1167_v29, 0.0 }
 0x1c8   :  { %248 = vadd.xlane.f32.xlu1 %v246_v30 }
 0x1ca   :  { %v1169_v31 = vpop.eup %1168 }
 0x1cb   :  { %v247_v32 = vsel %vm231_vm1, %v1169_v31, 0.0 }
 0x1cc   :  { %250 = vadd.xlane.f32.xlu1 %v247_v32 }
 0x251   :  { %v249_v44 = vpop.xlane.xlu1 %248 }
 0x252   :  { %1170 = vrcp.f32 %v249_v44 }
 0x255   :  { %v251_v45 = vpop.xlane.xlu1 %250 }
 0x256   :  { %1172 = vrcp.f32 %v251_v45 }
 0x25f   :  { %v1171_v46 = vpop.eup %1170 }
 0x260   :  { %v253_v47 = vmul.f32 %v1171_v46, %v246_v30 }
 0x262   :  { %256 = vst [vmem:[%s1571_s11] sm:$0xff] %v253_v47 }
 0x263   :  { %v1173_v48 = vpop.eup %1172 }
 0x264   :  { %v255_v49 = vmul.f32 %v1173_v48, %v247_v32 }
 0x266   :  { %257 = vst [vmem:[%s1571_s11 + $0x8] sm:$0xff] %v255_v49  ;;  %v258_v51 = vpack.c.bf16 %v255_v49, %v253_v47 }
 0x268   :  { %1025 = vmatmul.mubr.bf16.vlgmr.msra.gmra.mxu1 %v258_v51  ;;  %v1165_v51 = vld [vmem:[#allocation10] sm:$0xff]  }
 0x269   :  { %1049 = vmatpush3.bf16.msra.mxu1 %v1134_v50  ;;  %1064 = vmatprep.mubr.msk.bf16.mxu1 %vm1323_vm0, %v1322_v0  ;;  %v1164_v50 = vld [vmem:[#allocation10 + $0x8] sm:$0xff]  }
 0x26a   :  { %1050 = vmatprep.subr.bf16.mxu1 %v1322_v0 }
 0x26d   :  { %1051 = vmatpush3.bf16.msra.mxu1 %v1135_v52 }
 0x26e   :  { %1052 = vmatprep.subr.bf16.mxu1 %v1322_v0 }
 0x271   :  { %1053 = vmatpush3.bf16.msra.mxu1 %v1137_v53 }
 0x272   :  { %1054 = vmatprep.subr.bf16.mxu1 %v1322_v0 }
 0x275   :  { %1055 = vmatpush3.bf16.msra.mxu1 %v1139_v54 }
 0x276   :  { %1056 = vmatprep.subr.bf16.mxu1 %v1322_v0 }
 0x279   :  { %1057 = vmatpush3.bf16.msra.mxu1 %v1141_v55 }
 0x27a   :  { %1058 = vmatprep.subr.bf16.mxu1 %v1322_v0 }
 0x27d   :  { %1059 = vmatpush3.bf16.msra.mxu1 %v1143_v56 }
 0x27e   :  { %1060 = vmatprep.subr.bf16.mxu1 %v1322_v0 }
 0x281   :  { %1061 = vmatpush3.bf16.msra.mxu1 %v1145_v57 }
 0x282   :  { %1062 = vmatprep.subr.bf16.mxu1 %v1322_v0 }
 0x285   :  { %1063 = vmatpush3.bf16.msra.mxu1 %v1147_v58 }
 0x286   :  { %1088 = vmatprep.subr.bf16.mxu1 %v1322_v0 }
 0x288   :  { %1065 = vmatmul.mubr.bf16.vlgmr.msra.gmra.mxu1 %v1450_v11  ;;  %v1152_v11 = vld [vmem:[#allocation9 + $0x28] sm:$0xff]  }
 0x289   :  { %1104 = vmatprep.mubr.msk.bf16.mxu1 %vm1323_vm0, %v1322_v0  ;;  %1089 = vmatpush3.bf16.msra.mxu1 %v1158_v18 }
 0x28a   :  { %1090 = vmatprep.subr.bf16.mxu1 %v1322_v0 }
 0x28d   :  { %1091 = vmatpush3.bf16.msra.mxu1 %v1159_v19 }
 0x28e   :  { %1092 = vmatprep.subr.bf16.mxu1 %v1322_v0 }
 0x291   :  { %1093 = vmatpush3.bf16.msra.mxu1 %v1160_v20 }
 0x292   :  { %1094 = vmatprep.subr.bf16.mxu1 %v1322_v0 }
 0x295   :  { %1095 = vmatpush3.bf16.msra.mxu1 %v1161_v21  ;;  %v932_v21 = vld [vmem:[%s1568_s8] ss:$0 sm:$0xff] }
 0x296   :  { %1096 = vmatprep.subr.bf16.mxu1 %v1322_v0 }
 0x299   :  { %1097 = vmatpush3.bf16.msra.mxu1 %v1162_v22 }
 0x29a   :  { %1098 = vmatprep.subr.bf16.mxu1 %v1322_v0 }
 0x29d   :  { %1099 = vmatpush3.bf16.msra.mxu1 %v1163_v23 }
 0x29e   :  { %1100 = vmatprep.subr.bf16.mxu1 %v1322_v0 }
 0x2a1   :  { %1101 = vmatpush3.bf16.msra.mxu1 %v1164_v50 }
 0x2a2   :  { %1102 = vmatprep.subr.bf16.mxu1 %v1322_v0 }
 0x2a5   :  { %1103 = vmatpush3.bf16.msra.mxu1 %v1165_v51 }
 0x328   :  { %v1508_v61 = vpop.f32.mrf.mxu1 }
 0x32a   :  { %v1026_v62 = vpop.f32.mrf.mxu1 }
 0x32c   :  { %v1510_v63 = vpop.f32.mrf.mxu1 }
 0x32d   :  { %v380_v1 = vpack.c.bf16 %v1510_v63, %v1508_v61 }
 0x32e   :  { %v1027_v2 = vpop.f32.mrf.mxu1 }
 0x32f   :  { %1045 = vmatmul.mubr.bf16.vlgmr.msra.gmra.mxu0 %v380_v1 }
 0x330   :  { %1084 = vmatprep.mubr.msk.bf16.mxu0 %vm1323_vm0, %v1322_v0  ;;  %1069 = vmatpush3.bf16.msra.mxu0 %v1150_v7 }
 0x331   :  { %1070 = vmatprep.subr.bf16.mxu0 %v1322_v0 }
 0x334   :  { %1071 = vmatpush3.bf16.msra.mxu0 %v1151_v8 }
 0x335   :  { %1072 = vmatprep.subr.bf16.mxu0 %v1322_v0 }
 0x338   :  { %1073 = vmatpush3.bf16.msra.mxu0 %v1152_v11 }
 0x339   :  { %1074 = vmatprep.subr.bf16.mxu0 %v1322_v0 }
 0x33c   :  { %1075 = vmatpush3.bf16.msra.mxu0 %v1153_v12 }
 0x33d   :  { %1076 = vmatprep.subr.bf16.mxu0 %v1322_v0 }
 0x340   :  { %1077 = vmatpush3.bf16.msra.mxu0 %v1154_v14 }
 0x341   :  { %1078 = vmatprep.subr.bf16.mxu0 %v1322_v0 }
 0x344   :  { %1079 = vmatpush3.bf16.msra.mxu0 %v1155_v15 }
 0x345   :  { %1080 = vmatprep.subr.bf16.mxu0 %v1322_v0 }
 0x348   :  { %v568_v3 = vpop.f32.mrf.mxu1  ;;  %1081 = vmatpush3.bf16.msra.mxu0 %v1156_v16 }
 0x349   :  { %1082 = vmatprep.subr.bf16.mxu0 %v1322_v0 }
 0x34a   :  { %v1066_v4 = vpop.f32.mrf.mxu1 }
 0x34c   :  { %v571_v5 = vpop.f32.mrf.mxu1  ;;  %1083 = vmatpush3.bf16.msra.mxu0 %v1157_v17 }
 0x34e   :  { %v1067_v6 = vpop.f32.mrf.mxu1 }
 0x3ef   :  { %v479_v24 = vpop.f32.mrf.mxu0 }
 0x3f0   :  { %v569_v26 = vadd.f32 %v568_v3, %v479_v24 }
 0x3f1   :  { %v1046_v27 = vpop.f32.mrf.mxu0 }
 0x3f2   :  { %v582_v28 = vadd.f32 %v913_v25, %v569_v26 }
 0x3f3   :  { %v482_v29 = vpop.f32.mrf.mxu0 }
 0x3f4   :  { %v914_v30 = vmul.f32 -1.442695, %v582_v28  ;;  %v572_v31 = vadd.f32 %v571_v5, %v482_v29 }
 0x3f5   :  { %v1047_v32 = vpop.f32.mrf.mxu0 }
 0x3f6   :  { %1174 = vpow2.f32 %v914_v30  ;;  %v583_v33 = vadd.f32 %v913_v25, %v572_v31 }
 0x3f8   :  { %v915_v34 = vmul.f32 -1.442695, %v583_v33 }
 0x3fa   :  { %1176 = vpow2.f32 %v915_v34 }
 0x403   :  { %v1175_v35 = vpop.eup %1174 }
 0x404   :  { %v590_v36 = vadd.f32 1.0, %v1175_v35 }
 0x406   :  { %1178 = vrcp.f32 %v590_v36 }
 0x407   :  { %v1177_v37 = vpop.eup %1176 }
 0x408   :  { %v591_v38 = vadd.f32 1.0, %v1177_v37 }
 0x40a   :  { %1180 = vrcp.f32 %v591_v38 }
 0x413   :  { %v1179_v39 = vpop.eup %1178 }
 0x414   :  { %v598_v40 = vsub.f32 1.0, %v1179_v39  ;;  %v596_v44 = vmul.f32 %v1179_v39, %v1440_v9 }
 0x416   :  { %v600_v43 = vmul.f32 %v598_v40, %v1508_v61 }
 0x417   :  { %v1181_v41 = vpop.eup %1180 }
 0x418   :  { %v599_v42 = vsub.f32 1.0, %v1181_v41  ;;  %v597_v45 = vmul.f32 %v1181_v41, %v1445_v10  ;;  %v602_v47 = vadd.f32 %v600_v43, %v596_v44 }
 0x41a   :  { %v601_v46 = vmul.f32 %v599_v42, %v1510_v63 }
 0x41c   :  { %v603_v48 = vadd.f32 %v601_v46, %v597_v45 }
 0x41e   :  { %v604_v49 = vpack.c.bf16 %v603_v48, %v602_v47 }
 0x420   :  { %1085 = vmatmul.mubr.bf16.vlgmr.msra.gmra.mxu0 %v604_v49 }
 0x4e0   :  { %v703_v52 = vpop.f32.mrf.mxu0 }
 0x4e1   :  { %v710_v55 = vmax.f32 %v703_v52, 0.0 }
 0x4e2   :  { %v1086_v53 = vpop.f32.mrf.mxu0 }
 0x4e4   :  { %v706_v54 = vpop.f32.mrf.mxu0 }
 0x4e5   :  { %v711_v56 = vmax.f32 %v706_v54, 0.0 }
 0x4e6   :  { %v1087_v57 = vpop.f32.mrf.mxu0 }
 0x4e7   :  { %v712_v58 = vpack.c.bf16 %v711_v56, %v710_v55 }
 0x4e9   :  { %1105 = vmatmul.mubr.bf16.vlgmr.msra.gmra.mxu1 %v712_v58 }
 0x5a9   :  { %v811_v59 = vpop.f32.mrf.mxu1 }
 0x5aa   :  { %v812_v60 = vadd.f32 %v811_v59, %v1440_v9 }
 0x5ab   :  { %v1106_v61 = vpop.f32.mrf.mxu1 }
 0x5ac   :  { %v819_v62 = vsel %vm818_vm2, %v812_v60, 0.0 }
 0x5ad   :  { %821 = vadd.xlane.f32.xlu0 %v819_v62  ;;  %v814_v0 = vpop.f32.mrf.mxu1 }
 0x5ae   :  { %v815_v63 = vadd.f32 %v814_v0, %v1445_v10 }
 0x5af   :  { %v1107_v1 = vpop.f32.mrf.mxu1 }
 0x5b0   :  { %v820_v2 = vsel %vm818_vm2, %v815_v63, 0.0 }
 0x5b1   :  { %823 = vadd.xlane.f32.xlu1 %v820_v2 }
 0x636   :  { %v822_v3 = vpop.xlane.xlu0 %821 }
 0x637   :  { %v825_v4 = vmul.f32 0.03125, %v822_v3 }
 0x639   :  { %v827_v5 = vsub.f32 %v812_v60, %v825_v4 }
 0x63a   :  { %v824_v6 = vpop.xlane.xlu1 %823 }
 0x63b   :  { %v826_v7 = vmul.f32 0.03125, %v824_v6  ;;  %v829_v9 = vsel %vm818_vm2, %v827_v5, 0.0 }
 0x63c   :  { %v831_v8 = vmul.f32 %v829_v9, %v829_v9 }
 0x63d   :  { %v828_v11 = vsub.f32 %v815_v63, %v826_v7 }
 0x63e   :  { %833 = vadd.xlane.f32.xlu0 %v831_v8 }
 0x63f   :  { %v830_v12 = vsel %vm818_vm2, %v828_v11, 0.0 }
 0x640   :  { %v832_v10 = vmul.f32 %v830_v12, %v830_v12 }
 0x642   :  { %835 = vadd.xlane.f32.xlu1 %v832_v10 }
 0x6c7   :  { %v834_v14 = vpop.xlane.xlu0 %833 }
 0x6c8   :  { %v837_v15 = vmul.f32 0.03125, %v834_v14 }
 0x6ca   :  { %v839_v16 = vadd.f32 1e-05, %v837_v15 }
 0x6cb   :  { %v836_v17 = vpop.xlane.xlu1 %835 }
 0x6cc   :  { %1182 = vrsqrt.f32 %v839_v16  ;;  %v838_v18 = vmul.f32 0.03125, %v836_v17 }
 0x6ce   :  { %v840_v19 = vadd.f32 1e-05, %v838_v18 }
 0x6d0   :  { %1184 = vrsqrt.f32 %v840_v19 }
 0x6d9   :  { %v1183_v20 = vpop.eup %1182 }
 0x6da   :  { %v843_v22 = vmul.f32 %v1183_v20, %v829_v9 }
 0x6dc   :  { %v852_v23 = vmul.f32 %v932_v21, %v843_v22 }
 0x6dd   :  { %v1185_v24 = vpop.eup %1184 }
 0x6de   :  { %v861_v25 = vadd.f32 %v933_v13, %v852_v23  ;;  %v844_v26 = vmul.f32 %v1185_v24, %v830_v12 }
 0x6e0   :  { %863 = vst [vmem:[%s1572_s12] sm:$0xff] %v861_v25  ;;  %v853_v27 = vmul.f32 %v932_v21, %v844_v26 }
 0x6e2   :  { %v862_v28 = vadd.f32 %v933_v13, %v853_v27 }
 0x6e4   :  { %864 = vst [vmem:[%s1572_s12 + $0x8] sm:$0xff] %v862_v28 }
 0x6e5   :  { %877 = vsyncpa [#allocation3], 1 }
 0x6e6   :  { %878 = vsyncpa [#allocation5], 1 }
 0x6e7   :  { %879 = vsyncpa [#allocation8], 1 }
 0x6e8   :  { %880 = vsyncpa [#allocation11], 1 }

</bundles_post_ra>
